<compile_context>
chip_gen: v6e
topology: v6e:2x2x1
jax: 0.10.0
libtpu: 0.0.40
codegen_flags: <defaults>
</compile_context>

<pallas_src>
import math
import functools

import jax
import jax.numpy as jnp
from jax.experimental import pallas as pl
from jax.experimental.pallas import tpu as pltpu


# ------------------------------ in-kernel helpers ------------------------------

def _layernorm(x, w, b, eps=1e-5):
    # F.layer_norm semantics: biased variance, eps inside sqrt.
    mu = jnp.mean(x, axis=-1, keepdims=True)
    xc = x - mu
    var = jnp.mean(xc * xc, axis=-1, keepdims=True)
    return xc * jax.lax.rsqrt(var + eps) * w + b


_SQRT_2_OVER_PI = math.sqrt(2.0 / math.pi)


def _gelu_tanh(x):
    # tanh-approx GELU: transcendental lands on the EUP slot instead of ~10 VALU
    # ops of an erf polynomial.  |delta| vs exact erf-GELU < ~1e-3, well inside
    # bf16-matmul noise.
    return 0.5 * x * (1.0 + jnp.tanh(_SQRT_2_OVER_PI * (x + 0.044715 * x * x * x)))


def _bf16(x):
    return x.astype(jnp.bfloat16)


# -------------------- ConvBlock kernel: L transformer layers + conv ------------

def _conv_group_kernel(x_ref,
                       ln1w_ref, ln1b_ref, wqkv_ref, bqkv_ref, wo_ref, bo_ref,
                       ln2w_ref, ln2b_ref, wfc_ref, bfc_ref, wp_ref, bp_ref,
                       wconv_ref, bconv_ref,
                       out_ref,
                       x_acc,
                       *, batch, seq, n_head):
    l = pl.program_id(0)

    @pl.when(l == 0)
    def _init():
        x_acc[...] = x_ref[...].astype(jnp.float32)

    x = x_acc[...]                                    # (N, C) f32 residual, N = B*T
    N, C = x.shape
    D = C // n_head
    scale = 1.0 / math.sqrt(D)

    # ----- x = x + c_proj(attn(ln_1(x))) -----
    h = _layernorm(x, ln1w_ref[0], ln1b_ref[0])
    qkv = jnp.dot(_bf16(h), wqkv_ref[0], preferred_element_type=jnp.float32)
    qkv = qkv + bqkv_ref[0]
    q = qkv[:, :C] * scale                            # fold 1/sqrt(D) into q once
    k = qkv[:, C:2 * C]
    v = qkv[:, 2 * C:]

    row = jax.lax.broadcasted_iota(jnp.int32, (seq, seq), 0)
    col = jax.lax.broadcasted_iota(jnp.int32, (seq, seq), 1)
    causal = col <= row

    wo = wo_ref[0]                                    # (H, D, C) head-major c_proj
    rows = []
    # TODO(synk): at real (T, D) sizes replace this unrolled (batch, head) loop
    # with a flash-style tiled attention; at toy shapes it is exact and tiny.
    for b in range(batch):
        r = slice(b * seq, (b + 1) * seq)
        y_b = jnp.zeros((seq, C), jnp.float32)
        for hh in range(n_head):
            cs = slice(hh * D, (hh + 1) * D)
            qb = _bf16(q[r, cs])
            kb = _bf16(k[r, cs])
            vb = _bf16(v[r, cs])
            att = jax.lax.dot_general(qb, kb, (((1,), (1,)), ((), ())),
                                      preferred_element_type=jnp.float32)
            att = jnp.where(causal, att, -1e30)       # f32 masking (safe finite min)
            att = att - jnp.max(att, axis=-1, keepdims=True)
            e = jnp.exp(att)
            p = e * pl.reciprocal(jnp.sum(e, axis=-1, keepdims=True), approx=True)
            o = jnp.dot(_bf16(p), vb, preferred_element_type=jnp.float32)  # (T, D)
            # fold the head "concat" directly into the output projection:
            y_b = y_b + jnp.dot(_bf16(o), wo[hh], preferred_element_type=jnp.float32)
        rows.append(y_b)
    y = jnp.concatenate(rows, axis=0) + bo_ref[0]     # row (sublane) concat only
    x = x + y

    # ----- x = x + c_proj(gelu(c_fc(ln_2(x)))) -----
    h = _layernorm(x, ln2w_ref[0], ln2b_ref[0])
    h = jnp.dot(_bf16(h), wfc_ref[0], preferred_element_type=jnp.float32) + bfc_ref[0]
    h = _gelu_tanh(h)
    h = jnp.dot(_bf16(h), wp_ref[0], preferred_element_type=jnp.float32) + bp_ref[0]
    x = x + h

    x_acc[...] = x                                    # residual persists across layers

    # ----- after the last Block of this group: Conv1d(kernel_size=1), C -> C//2 ----
    @pl.when(l == pl.num_programs(0) - 1)
    def _conv():
        yc = jnp.dot(_bf16(x), wconv_ref[...], preferred_element_type=jnp.float32)
        out_ref[...] = (yc + bconv_ref[...]).astype(out_ref.dtype)


def conv_group_forward(x2, g, *, batch, seq, n_head):
    """One ConvBlock: L stacked transformer Blocks + fused pointwise conv (C->C//2)."""
    N, C = x2.shape
    L = g["w_qkv"].shape[0]
    Ch = g["w_conv"].shape[1]
    D = C // n_head

    def per_layer(shape):
        nd = len(shape)
        return pl.BlockSpec((1,) + shape, lambda l, _nd=nd: (l,) + (0,) * _nd)

    def shared(shape):
        nd = len(shape)
        return pl.BlockSpec(shape, lambda l, _nd=nd: (0,) * _nd)

    kernel = functools.partial(_conv_group_kernel, batch=batch, seq=seq, n_head=n_head)
    return pl.pallas_call(
        kernel,
        out_shape=jax.ShapeDtypeStruct((N, Ch), jnp.float32),
        grid=(L,),
        in_specs=[
            shared((N, C)),                                  # x (read once at l==0)
            per_layer((1, C)), per_layer((1, C)),            # ln_1 w, b
            per_layer((C, 3 * C)), per_layer((1, 3 * C)),    # c_attn W (bf16), b
            per_layer((n_head, D, C)), per_layer((1, C)),    # attn c_proj (head-major, bf16), b
            per_layer((1, C)), per_layer((1, C)),            # ln_2 w, b
            per_layer((C, 4 * C)), per_layer((1, 4 * C)),    # c_fc W (bf16), b
            per_layer((4 * C, C)), per_layer((1, C)),        # mlp c_proj W (bf16), b
            shared((C, Ch)), shared((1, Ch)),                # conv1d k=1 W (bf16), b
        ],
        out_specs=shared((N, Ch)),
        scratch_shapes=[pltpu.VMEM((N, C), jnp.float32)],    # resident residual x
        compiler_params=pltpu.CompilerParams(
            dimension_semantics=("arbitrary",),              # layers are sequential
            vmem_limit_bytes=48 * 1024 * 1024,               # headroom below v7x 64 MiB
        ),
    )(x2, g["ln1_w"], g["ln1_b"], g["w_qkv"], g["b_qkv"],
      g["w_attn_proj"], g["b_attn_proj"], g["ln2_w"], g["ln2_b"],
      g["w_fc"], g["b_fc"], g["w_mlp_proj"], g["b_mlp_proj"],
      g["w_conv"], g["b_conv"])


# --------------------------- final ln_f + lm_head kernel ------------------------

def _final_head_kernel(x_ref, lnw_ref, lnb_ref, wlm_ref, out_ref):
    # LN recomputed per vocab tile (tiny vs the streamed weight tile).
    h = _layernorm(x_ref[...], lnw_ref[...], lnb_ref[...])
    out_ref[...] = jnp.dot(_bf16(h), wlm_ref[...],
                           preferred_element_type=jnp.float32)


def final_head(x2, lnf_w, lnf_b, w_lm, *, tile_v=128, tile_rows=256):
    N, Cf = x2.shape
    V = w_lm.shape[1]
    Vp = pl.cdiv(V, tile_v) * tile_v
    if Vp != V:                                       # pad vocab to lane-dense 128
        w_lm = jnp.pad(w_lm, ((0, 0), (0, Vp - V)))
    tm = N if N <= tile_rows else tile_rows
    assert N % tm == 0
    logits = pl.pallas_call(
        _final_head_kernel,
        out_shape=jax.ShapeDtypeStruct((N, Vp), jnp.float32),
        grid=(N // tm, Vp // tile_v),
        in_specs=[
            pl.BlockSpec((tm, Cf), lambda i, j: (i, 0)),
            pl.BlockSpec((1, Cf), lambda i, j: (0, 0)),
            pl.BlockSpec((1, Cf), lambda i, j: (0, 0)),
            pl.BlockSpec((Cf, tile_v), lambda i, j: (0, j)),   # stream weight over V
        ],
        out_specs=pl.BlockSpec((tm, tile_v), lambda i, j: (i, j)),
        compiler_params=pltpu.CompilerParams(
            dimension_semantics=("parallel", "parallel")),
    )(x2, lnf_w, lnf_b, w_lm)
    return logits[:, :V] if Vp != V else logits


# --------------------------- parameter init (deterministic) ---------------------

def init_params(key, *, n_layer, n_head, n_embd, vocab_size, block_size,
                num_blocks_before_conv):
    assert n_layer % num_blocks_before_conv == 0
    num_groups = n_layer // num_blocks_before_conv
    final_dim = n_embd // (2 ** num_groups)
    std = 0.02
    proj_std = 0.02 / math.sqrt(2 * n_layer)          # c_proj special init

    k_emb, k_pos, k_lm, k_groups = jax.random.split(key, 4)
    params = {
        "wte": std * jax.random.normal(k_emb, (vocab_size, n_embd), jnp.float32),
        "wpe": std * jax.random.normal(k_pos, (block_size, n_embd), jnp.float32),
        "lnf_w": jnp.ones((1, final_dim), jnp.float32),
        "lnf_b": jnp.zeros((1, final_dim), jnp.float32),
        # matmul weights stored bf16 (MXU-native, half the HBM->VMEM bytes)
        "lm_head": (std * jax.random.normal(k_lm, (final_dim, vocab_size))).astype(jnp.bfloat16),
        "conv_groups": [],
    }
    gkeys = jax.random.split(k_groups, num_groups)
    L = num_blocks_before_conv
    cur = n_embd
    for gi in range(num_groups):
        D = cur // n_head
        k1, k2, k3, k4, k5 = jax.random.split(gkeys[gi], 5)
        grp = {
            "ln1_w": jnp.ones((L, 1, cur), jnp.float32),
            "ln1_b": jnp.zeros((L, 1, cur), jnp.float32),
            "w_qkv": (std * jax.random.normal(k1, (L, cur, 3 * cur))).astype(jnp.bfloat16),
            "b_qkv": jnp.zeros((L, 1, 3 * cur), jnp.float32),
            # head-major (L, H, D, C) so the kernel folds the head concat into
            # per-head output-projection accumulates.
            "w_attn_proj": (proj_std * jax.random.normal(k2, (L, n_head, D, cur))).astype(jnp.bfloat16),
            "b_attn_proj": jnp.zeros((L, 1, cur), jnp.float32),
            "ln2_w": jnp.ones((L, 1, cur), jnp.float32),
            "ln2_b": jnp.zeros((L, 1, cur), jnp.float32),
            "w_fc": (std * jax.random.normal(k3, (L, cur, 4 * cur))).astype(jnp.bfloat16),
            "b_fc": jnp.zeros((L, 1, 4 * cur), jnp.float32),
            "w_mlp_proj": (proj_std * jax.random.normal(k4, (L, 4 * cur, cur))).astype(jnp.bfloat16),
            "b_mlp_proj": jnp.zeros((L, 1, cur), jnp.float32),
            # Conv1d(cur, cur//2, kernel_size=1) == pointwise channel matmul (+bias)
            "w_conv": (std * jax.random.normal(k5, (cur, cur // 2))).astype(jnp.bfloat16),
            "b_conv": jnp.zeros((1, cur // 2), jnp.float32),
        }
        params["conv_groups"].append(grp)
        cur //= 2
    assert cur == final_dim
    return params


# ----------------------------------- forward ------------------------------------

def convgpt_forward(idx, params, *, n_head, block_size):
    B, T = idx.shape
    assert T <= block_size
    tok = jnp.take(params["wte"], idx, axis=0)        # embedding gather: plain-JAX glue
    pos = params["wpe"][:T]
    x = tok + pos[None, :, :]                         # dropout p=0 -> no-op
    x2 = x.reshape(B * T, -1)                         # flatten (B,T) into rows for MXU
    for grp in params["conv_groups"]:
        x2 = conv_group_forward(x2, grp, batch=B, seq=T, n_head=n_head)
    logits2 = final_head(x2, params["lnf_w"], params["lnf_b"], params["lm_head"])
    return logits2.reshape(B, T, -1)
    # TODO(synk): targets/cross_entropy loss branch not implemented; forward is
    # used with targets=None so loss is None.


# ------------------------------------- main --------------------------------------

if __name__ == "__main__":
    cfg = dict(n_layer=4, n_head=4, n_embd=32, vocab_size=256, block_size=16,
               num_blocks_before_conv=2)
    B, T = 2, 8

    key = jax.random.PRNGKey(0)
    k_params, k_idx = jax.random.split(key)
    params = init_params(k_params, **cfg)
    idx = jax.random.randint(k_idx, (B, T), 0, cfg["vocab_size"], dtype=jnp.int32)

    logits = convgpt_forward(idx, params, n_head=cfg["n_head"],
                             block_size=cfg["block_size"])
    logits = jax.block_until_ready(logits)

    assert logits.shape == (B, T, cfg["vocab_size"]), logits.shape
    assert logits.dtype == jnp.float32
    assert bool(jnp.all(jnp.isfinite(logits)))
    print("KERNEL_OK")
</pallas_src>

<mosaic_0001>
module attributes {stable_mosaic.version = 11 : i64} {
  func.func @_conv_group_kernel(%arg0: i32, %arg1: memref<16x32xf32, #tpu.memory_space<vmem>>, %arg2: memref<1x1x32xf32, #tpu.memory_space<vmem>>, %arg3: memref<1x1x32xf32, #tpu.memory_space<vmem>>, %arg4: memref<1x32x96xbf16, #tpu.memory_space<vmem>>, %arg5: memref<1x1x96xf32, #tpu.memory_space<vmem>>, %arg6: memref<1x4x8x32xbf16, #tpu.memory_space<vmem>>, %arg7: memref<1x1x32xf32, #tpu.memory_space<vmem>>, %arg8: memref<1x1x32xf32, #tpu.memory_space<vmem>>, %arg9: memref<1x1x32xf32, #tpu.memory_space<vmem>>, %arg10: memref<1x32x128xbf16, #tpu.memory_space<vmem>>, %arg11: memref<1x1x128xf32, #tpu.memory_space<vmem>>, %arg12: memref<1x128x32xbf16, #tpu.memory_space<vmem>>, %arg13: memref<1x1x32xf32, #tpu.memory_space<vmem>>, %arg14: memref<32x16xbf16, #tpu.memory_space<vmem>>, %arg15: memref<1x16xf32, #tpu.memory_space<vmem>>, %arg16: memref<16x16xf32, #tpu.memory_space<vmem>>, %arg17: memref<16x32xf32, #tpu.memory_space<vmem>>) attributes {dimension_semantics = [#tpu.dimension_semantics<arbitrary>], iteration_bounds = array<i64: 2>, scalar_prefetch = 0 : i64, scratch_operands = 1 : i64, tpu.core_type = #tpu.core_type<tc>, window_params = [{pipeline_mode = #tpu.pipeline_mode<synchronous>, transform_indices = @transform_0, window_bounds = array<i64: 16, 32>}, {transform_indices = @transform_1, window_bounds = array<i64: 1, 1, 32>}, {transform_indices = @transform_2, window_bounds = array<i64: 1, 1, 32>}, {transform_indices = @transform_3, window_bounds = array<i64: 1, 32, 96>}, {transform_indices = @transform_4, window_bounds = array<i64: 1, 1, 96>}, {transform_indices = @transform_5, window_bounds = array<i64: 1, 4, 8, 32>}, {transform_indices = @transform_6, window_bounds = array<i64: 1, 1, 32>}, {transform_indices = @transform_7, window_bounds = array<i64: 1, 1, 32>}, {transform_indices = @transform_8, window_bounds = array<i64: 1, 1, 32>}, {transform_indices = @transform_9, window_bounds = array<i64: 1, 32, 128>}, {transform_indices = @transform_10, window_bounds = array<i64: 1, 1, 128>}, {transform_indices = @transform_11, window_bounds = array<i64: 1, 128, 32>}, {transform_indices = @transform_12, window_bounds = array<i64: 1, 1, 32>}, {pipeline_mode = #tpu.pipeline_mode<synchronous>, transform_indices = @transform_13, window_bounds = array<i64: 32, 16>}, {pipeline_mode = #tpu.pipeline_mode<synchronous>, transform_indices = @transform_14, window_bounds = array<i64: 1, 16>}, {pipeline_mode = #tpu.pipeline_mode<synchronous>, transform_indices = @transform_15, window_bounds = array<i64: 16, 16>}]} {
    %c0_i32 = arith.constant 0 : i32
    %0 = arith.cmpi eq, %arg0, %c0_i32 : i32
    %1 = arith.extui %0 : i1 to i32
    %c0_i32_0 = arith.constant 0 : i32
    %2 = arith.cmpi ne, %1, %c0_i32_0 : i32
    scf.if %2 {
      %c0_109 = arith.constant 0 : index
      %c0_110 = arith.constant 0 : index
      %320 = vector.load %arg1[%c0_109, %c0_110] : memref<16x32xf32, #tpu.memory_space<vmem>>, vector<16x32xf32>
      %c0_111 = arith.constant 0 : index
      %c0_112 = arith.constant 0 : index
      %321 = vector.load %arg17[%c0_111, %c0_112] : memref<16x32xf32, #tpu.memory_space<vmem>>, vector<16x32xf32>
      tpu.vector_store %arg17[%c0_111, %c0_112], %320 {strides = array<i32>} : memref<16x32xf32, #tpu.memory_space<vmem>>, vector<16x32xf32>,
    } else {
    }
    %c0 = arith.constant 0 : index
    %c0_1 = arith.constant 0 : index
    %3 = vector.load %arg17[%c0, %c0_1] : memref<16x32xf32, #tpu.memory_space<vmem>>, vector<16x32xf32>
    %c0_2 = arith.constant 0 : index
    %c0_3 = arith.constant 0 : index
    %c0_4 = arith.constant 0 : index
    %4 = vector.load %arg2[%c0_2, %c0_3, %c0_4] : memref<1x1x32xf32, #tpu.memory_space<vmem>>, vector<1x1x32xf32>
    %5 = vector.shape_cast %4 : vector<1x1x32xf32> to vector<1x32xf32>
    %c0_5 = arith.constant 0 : index
    %c0_6 = arith.constant 0 : index
    %c0_7 = arith.constant 0 : index
    %6 = vector.load %arg3[%c0_5, %c0_6, %c0_7] : memref<1x1x32xf32, #tpu.memory_space<vmem>>, vector<1x1x32xf32>
    %7 = vector.shape_cast %6 : vector<1x1x32xf32> to vector<1x32xf32>
    %cst = arith.constant dense<0.000000e+00> : vector<16xf32>
    %8 = vector.multi_reduction <add>, %3, %cst [1] : vector<16x32xf32> to vector<16xf32>
    %9 = vector.shape_cast %8 : vector<16xf32> to vector<16x1xf32>
    %cst_8 = arith.constant 3.200000e+01 : f32
    %10 = vector.broadcast %cst_8 : f32 to vector<16x1xf32>
    %11 = arith.divf %9, %10 : vector<16x1xf32>
    %12 = vector.broadcast %11 : vector<16x1xf32> to vector<16x32xf32>
    %13 = arith.subf %3, %12 : vector<16x32xf32>
    %14 = arith.mulf %13, %13 : vector<16x32xf32>
    %cst_9 = arith.constant dense<0.000000e+00> : vector<16xf32>
    %15 = vector.multi_reduction <add>, %14, %cst_9 [1] : vector<16x32xf32> to vector<16xf32>
    %16 = vector.shape_cast %15 : vector<16xf32> to vector<16x1xf32>
    %cst_10 = arith.constant 3.200000e+01 : f32
    %17 = vector.broadcast %cst_10 : f32 to vector<16x1xf32>
    %18 = arith.divf %16, %17 : vector<16x1xf32>
    %cst_11 = arith.constant 9.99999974E-6 : f32
    %19 = vector.broadcast %cst_11 : f32 to vector<16x1xf32>
    %20 = arith.addf %18, %19 : vector<16x1xf32>
    %21 = math.rsqrt %20 : vector<16x1xf32>
    %22 = vector.broadcast %21 : vector<16x1xf32> to vector<16x32xf32>
    %23 = arith.mulf %13, %22 : vector<16x32xf32>
    %24 = vector.broadcast %5 : vector<1x32xf32> to vector<16x32xf32>
    %25 = arith.mulf %23, %24 : vector<16x32xf32>
    %26 = vector.broadcast %7 : vector<1x32xf32> to vector<16x32xf32>
    %27 = arith.addf %25, %26 : vector<16x32xf32>
    %28 = arith.truncf %27 : vector<16x32xf32> to vector<16x32xbf16>
    %c0_12 = arith.constant 0 : index
    %c0_13 = arith.constant 0 : index
    %c0_14 = arith.constant 0 : index
    %29 = vector.load %arg4[%c0_12, %c0_13, %c0_14] : memref<1x32x96xbf16, #tpu.memory_space<vmem>>, vector<1x32x96xbf16>
    %30 = vector.shape_cast %29 : vector<1x32x96xbf16> to vector<32x96xbf16>
    %cst_15 = arith.constant dense<0.000000e+00> : vector<16x96xf32>
    %31 = tpu.matmul %28, %30, %cst_15 {dimension_numbers = #tpu.dot_dimension_numbers<[1], [0], [0], [1], [0, 0, 1, 1], [], []>} : vector<16x32xbf16>, vector<32x96xbf16>, vector<16x96xf32> -> vector<16x96xf32>
    %c0_16 = arith.constant 0 : index
    %c0_17 = arith.constant 0 : index
    %c0_18 = arith.constant 0 : index
    %32 = vector.load %arg5[%c0_16, %c0_17, %c0_18] : memref<1x1x96xf32, #tpu.memory_space<vmem>>, vector<1x1x96xf32>
    %33 = vector.shape_cast %32 : vector<1x1x96xf32> to vector<1x96xf32>
    %34 = vector.broadcast %33 : vector<1x96xf32> to vector<16x96xf32>
    %35 = arith.addf %31, %34 : vector<16x96xf32>
    %36 = vector.extract_strided_slice %35 {offsets = [0, 0], sizes = [16, 32], strides = [1, 1]} : vector<16x96xf32> to vector<16x32xf32>
    %cst_19 = arith.constant 0.353553385 : f32
    %37 = vector.broadcast %cst_19 : f32 to vector<16x32xf32>
    %38 = arith.mulf %36, %37 : vector<16x32xf32>
    %39 = vector.extract_strided_slice %35 {offsets = [0, 32], sizes = [16, 32], strides = [1, 1]} : vector<16x96xf32> to vector<16x32xf32>
    %40 = vector.extract_strided_slice %35 {offsets = [0, 64], sizes = [16, 32], strides = [1, 1]} : vector<16x96xf32> to vector<16x32xf32>
    %41 = tpu.iota {dimensions = array<i32: 0>} : vector<8x8xi32>
    %42 = tpu.iota {dimensions = array<i32: 1>} : vector<8x8xi32>
    %43 = arith.cmpi sle, %42, %41 : vector<8x8xi32>
    %c0_20 = arith.constant 0 : index
    %c0_21 = arith.constant 0 : index
    %c0_22 = arith.constant 0 : index
    %c0_23 = arith.constant 0 : index
    %44 = vector.load %arg6[%c0_20, %c0_21, %c0_22, %c0_23] : memref<1x4x8x32xbf16, #tpu.memory_space<vmem>>, vector<1x4x8x32xbf16>
    %45 = vector.shape_cast %44 : vector<1x4x8x32xbf16> to vector<4x8x32xbf16>
    %cst_24 = arith.constant 0.000000e+00 : f32
    %46 = vector.broadcast %cst_24 : f32 to vector<8x32xf32>
    %47 = vector.extract_strided_slice %38 {offsets = [0, 0], sizes = [8, 8], strides = [1, 1]} : vector<16x32xf32> to vector<8x8xf32>
    %48 = arith.truncf %47 : vector<8x8xf32> to vector<8x8xbf16>
    %49 = vector.extract_strided_slice %39 {offsets = [0, 0], sizes = [8, 8], strides = [1, 1]} : vector<16x32xf32> to vector<8x8xf32>
    %50 = arith.truncf %49 : vector<8x8xf32> to vector<8x8xbf16>
    %51 = vector.extract_strided_slice %40 {offsets = [0, 0], sizes = [8, 8], strides = [1, 1]} : vector<16x32xf32> to vector<8x8xf32>
    %52 = arith.truncf %51 : vector<8x8xf32> to vector<8x8xbf16>
    %cst_25 = arith.constant dense<0.000000e+00> : vector<8x8xf32>
    %53 = tpu.matmul %48, %50, %cst_25 {dimension_numbers = #tpu.dot_dimension_numbers<[1], [1], [0], [0], [0, 0, 1, 0], [], []>} : vector<8x8xbf16>, vector<8x8xbf16>, vector<8x8xf32> -> vector<8x8xf32>
    %cst_26 = arith.constant -1.000000e+30 : f32
    %54 = vector.broadcast %cst_26 : f32 to vector<8x8xf32>
    %55 = arith.select %43, %53, %54 : vector<8x8xi1>, vector<8x8xf32>
    %cst_27 = arith.constant dense<0xFF800000> : vector<8xf32>
    %56 = vector.multi_reduction <maximumf>, %55, %cst_27 [1] : vector<8x8xf32> to vector<8xf32>
    %57 = vector.shape_cast %56 : vector<8xf32> to vector<8x1xf32>
    %58 = vector.broadcast %57 : vector<8x1xf32> to vector<8x8xf32>
    %59 = arith.subf %55, %58 : vector<8x8xf32>
    %60 = math.exp %59 : vector<8x8xf32>
    %cst_28 = arith.constant dense<0.000000e+00> : vector<8xf32>
    %61 = vector.multi_reduction <add>, %60, %cst_28 [1] : vector<8x8xf32> to vector<8xf32>
    %62 = vector.shape_cast %61 : vector<8xf32> to vector<8x1xf32>
    %63 = tpu.reciprocal %62 {approx = true} : vector<8x1xf32> -> vector<8x1xf32>
    %64 = vector.broadcast %63 : vector<8x1xf32> to vector<8x8xf32>
    %65 = arith.mulf %60, %64 : vector<8x8xf32>
    %66 = arith.truncf %65 : vector<8x8xf32> to vector<8x8xbf16>
    %cst_29 = arith.constant dense<0.000000e+00> : vector<8x8xf32>
    %67 = tpu.matmul %66, %52, %cst_29 {dimension_numbers = #tpu.dot_dimension_numbers<[1], [0], [0], [1], [0, 0, 1, 1], [], []>} : vector<8x8xbf16>, vector<8x8xbf16>, vector<8x8xf32> -> vector<8x8xf32>
    %68 = arith.truncf %67 : vector<8x8xf32> to vector<8x8xbf16>
    %69 = vector.extract_strided_slice %45 {offsets = [0, 0, 0], sizes = [1, 8, 32], strides = [1, 1, 1]} : vector<4x8x32xbf16> to vector<1x8x32xbf16>
    %70 = vector.shape_cast %69 : vector<1x8x32xbf16> to vector<8x32xbf16>
    %cst_30 = arith.constant dense<0.000000e+00> : vector<8x32xf32>
    %71 = tpu.matmul %68, %70, %cst_30 {dimension_numbers = #tpu.dot_dimension_numbers<[1], [0], [0], [1], [0, 0, 1, 1], [], []>} : vector<8x8xbf16>, vector<8x32xbf16>, vector<8x32xf32> -> vector<8x32xf32>
    %72 = arith.addf %46, %71 : vector<8x32xf32>
    %73 = vector.extract_strided_slice %38 {offsets = [0, 8], sizes = [8, 8], strides = [1, 1]} : vector<16x32xf32> to vector<8x8xf32>
    %74 = arith.truncf %73 : vector<8x8xf32> to vector<8x8xbf16>
    %75 = vector.extract_strided_slice %39 {offsets = [0, 8], sizes = [8, 8], strides = [1, 1]} : vector<16x32xf32> to vector<8x8xf32>
    %76 = arith.truncf %75 : vector<8x8xf32> to vector<8x8xbf16>
    %77 = vector.extract_strided_slice %40 {offsets = [0, 8], sizes = [8, 8], strides = [1, 1]} : vector<16x32xf32> to vector<8x8xf32>
    %78 = arith.truncf %77 : vector<8x8xf32> to vector<8x8xbf16>
    %cst_31 = arith.constant dense<0.000000e+00> : vector<8x8xf32>
    %79 = tpu.matmul %74, %76, %cst_31 {dimension_numbers = #tpu.dot_dimension_numbers<[1], [1], [0], [0], [0, 0, 1, 0], [], []>} : vector<8x8xbf16>, vector<8x8xbf16>, vector<8x8xf32> -> vector<8x8xf32>
    %cst_32 = arith.constant -1.000000e+30 : f32
    %80 = vector.broadcast %cst_32 : f32 to vector<8x8xf32>
    %81 = arith.select %43, %79, %80 : vector<8x8xi1>, vector<8x8xf32>
    %cst_33 = arith.constant dense<0xFF800000> : vector<8xf32>
    %82 = vector.multi_reduction <maximumf>, %81, %cst_33 [1] : vector<8x8xf32> to vector<8xf32>
    %83 = vector.shape_cast %82 : vector<8xf32> to vector<8x1xf32>
    %84 = vector.broadcast %83 : vector<8x1xf32> to vector<8x8xf32>
    %85 = arith.subf %81, %84 : vector<8x8xf32>
    %86 = math.exp %85 : vector<8x8xf32>
    %cst_34 = arith.constant dense<0.000000e+00> : vector<8xf32>
    %87 = vector.multi_reduction <add>, %86, %cst_34 [1] : vector<8x8xf32> to vector<8xf32>
    %88 = vector.shape_cast %87 : vector<8xf32> to vector<8x1xf32>
    %89 = tpu.reciprocal %88 {approx = true} : vector<8x1xf32> -> vector<8x1xf32>
    %90 = vector.broadcast %89 : vector<8x1xf32> to vector<8x8xf32>
    %91 = arith.mulf %86, %90 : vector<8x8xf32>
    %92 = arith.truncf %91 : vector<8x8xf32> to vector<8x8xbf16>
    %cst_35 = arith.constant dense<0.000000e+00> : vector<8x8xf32>
    %93 = tpu.matmul %92, %78, %cst_35 {dimension_numbers = #tpu.dot_dimension_numbers<[1], [0], [0], [1], [0, 0, 1, 1], [], []>} : vector<8x8xbf16>, vector<8x8xbf16>, vector<8x8xf32> -> vector<8x8xf32>
    %94 = arith.truncf %93 : vector<8x8xf32> to vector<8x8xbf16>
    %95 = vector.extract_strided_slice %45 {offsets = [1, 0, 0], sizes = [1, 8, 32], strides = [1, 1, 1]} : vector<4x8x32xbf16> to vector<1x8x32xbf16>
    %96 = vector.shape_cast %95 : vector<1x8x32xbf16> to vector<8x32xbf16>
    %cst_36 = arith.constant dense<0.000000e+00> : vector<8x32xf32>
    %97 = tpu.matmul %94, %96, %cst_36 {dimension_numbers = #tpu.dot_dimension_numbers<[1], [0], [0], [1], [0, 0, 1, 1], [], []>} : vector<8x8xbf16>, vector<8x32xbf16>, vector<8x32xf32> -> vector<8x32xf32>
    %98 = arith.addf %72, %97 : vector<8x32xf32>
    %99 = vector.extract_strided_slice %38 {offsets = [0, 16], sizes = [8, 8], strides = [1, 1]} : vector<16x32xf32> to vector<8x8xf32>
    %100 = arith.truncf %99 : vector<8x8xf32> to vector<8x8xbf16>
    %101 = vector.extract_strided_slice %39 {offsets = [0, 16], sizes = [8, 8], strides = [1, 1]} : vector<16x32xf32> to vector<8x8xf32>
    %102 = arith.truncf %101 : vector<8x8xf32> to vector<8x8xbf16>
    %103 = vector.extract_strided_slice %40 {offsets = [0, 16], sizes = [8, 8], strides = [1, 1]} : vector<16x32xf32> to vector<8x8xf32>
    %104 = arith.truncf %103 : vector<8x8xf32> to vector<8x8xbf16>
    %cst_37 = arith.constant dense<0.000000e+00> : vector<8x8xf32>
    %105 = tpu.matmul %100, %102, %cst_37 {dimension_numbers = #tpu.dot_dimension_numbers<[1], [1], [0], [0], [0, 0, 1, 0], [], []>} : vector<8x8xbf16>, vector<8x8xbf16>, vector<8x8xf32> -> vector<8x8xf32>
    %cst_38 = arith.constant -1.000000e+30 : f32
    %106 = vector.broadcast %cst_38 : f32 to vector<8x8xf32>
    %107 = arith.select %43, %105, %106 : vector<8x8xi1>, vector<8x8xf32>
    %cst_39 = arith.constant dense<0xFF800000> : vector<8xf32>
    %108 = vector.multi_reduction <maximumf>, %107, %cst_39 [1] : vector<8x8xf32> to vector<8xf32>
    %109 = vector.shape_cast %108 : vector<8xf32> to vector<8x1xf32>
    %110 = vector.broadcast %109 : vector<8x1xf32> to vector<8x8xf32>
    %111 = arith.subf %107, %110 : vector<8x8xf32>
    %112 = math.exp %111 : vector<8x8xf32>
    %cst_40 = arith.constant dense<0.000000e+00> : vector<8xf32>
    %113 = vector.multi_reduction <add>, %112, %cst_40 [1] : vector<8x8xf32> to vector<8xf32>
    %114 = vector.shape_cast %113 : vector<8xf32> to vector<8x1xf32>
    %115 = tpu.reciprocal %114 {approx = true} : vector<8x1xf32> -> vector<8x1xf32>
    %116 = vector.broadcast %115 : vector<8x1xf32> to vector<8x8xf32>
    %117 = arith.mulf %112, %116 : vector<8x8xf32>
    %118 = arith.truncf %117 : vector<8x8xf32> to vector<8x8xbf16>
    %cst_41 = arith.constant dense<0.000000e+00> : vector<8x8xf32>
    %119 = tpu.matmul %118, %104, %cst_41 {dimension_numbers = #tpu.dot_dimension_numbers<[1], [0], [0], [1], [0, 0, 1, 1], [], []>} : vector<8x8xbf16>, vector<8x8xbf16>, vector<8x8xf32> -> vector<8x8xf32>
    %120 = arith.truncf %119 : vector<8x8xf32> to vector<8x8xbf16>
    %121 = vector.extract_strided_slice %45 {offsets = [2, 0, 0], sizes = [1, 8, 32], strides = [1, 1, 1]} : vector<4x8x32xbf16> to vector<1x8x32xbf16>
    %122 = vector.shape_cast %121 : vector<1x8x32xbf16> to vector<8x32xbf16>
    %cst_42 = arith.constant dense<0.000000e+00> : vector<8x32xf32>
    %123 = tpu.matmul %120, %122, %cst_42 {dimension_numbers = #tpu.dot_dimension_numbers<[1], [0], [0], [1], [0, 0, 1, 1], [], []>} : vector<8x8xbf16>, vector<8x32xbf16>, vector<8x32xf32> -> vector<8x32xf32>
    %124 = arith.addf %98, %123 : vector<8x32xf32>
    %125 = vector.extract_strided_slice %38 {offsets = [0, 24], sizes = [8, 8], strides = [1, 1]} : vector<16x32xf32> to vector<8x8xf32>
    %126 = arith.truncf %125 : vector<8x8xf32> to vector<8x8xbf16>
    %127 = vector.extract_strided_slice %39 {offsets = [0, 24], sizes = [8, 8], strides = [1, 1]} : vector<16x32xf32> to vector<8x8xf32>
    %128 = arith.truncf %127 : vector<8x8xf32> to vector<8x8xbf16>
    %129 = vector.extract_strided_slice %40 {offsets = [0, 24], sizes = [8, 8], strides = [1, 1]} : vector<16x32xf32> to vector<8x8xf32>
    %130 = arith.truncf %129 : vector<8x8xf32> to vector<8x8xbf16>
    %cst_43 = arith.constant dense<0.000000e+00> : vector<8x8xf32>
    %131 = tpu.matmul %126, %128, %cst_43 {dimension_numbers = #tpu.dot_dimension_numbers<[1], [1], [0], [0], [0, 0, 1, 0], [], []>} : vector<8x8xbf16>, vector<8x8xbf16>, vector<8x8xf32> -> vector<8x8xf32>
    %cst_44 = arith.constant -1.000000e+30 : f32
    %132 = vector.broadcast %cst_44 : f32 to vector<8x8xf32>
    %133 = arith.select %43, %131, %132 : vector<8x8xi1>, vector<8x8xf32>
    %cst_45 = arith.constant dense<0xFF800000> : vector<8xf32>
    %134 = vector.multi_reduction <maximumf>, %133, %cst_45 [1] : vector<8x8xf32> to vector<8xf32>
    %135 = vector.shape_cast %134 : vector<8xf32> to vector<8x1xf32>
    %136 = vector.broadcast %135 : vector<8x1xf32> to vector<8x8xf32>
    %137 = arith.subf %133, %136 : vector<8x8xf32>
    %138 = math.exp %137 : vector<8x8xf32>
    %cst_46 = arith.constant dense<0.000000e+00> : vector<8xf32>
    %139 = vector.multi_reduction <add>, %138, %cst_46 [1] : vector<8x8xf32> to vector<8xf32>
    %140 = vector.shape_cast %139 : vector<8xf32> to vector<8x1xf32>
    %141 = tpu.reciprocal %140 {approx = true} : vector<8x1xf32> -> vector<8x1xf32>
    %142 = vector.broadcast %141 : vector<8x1xf32> to vector<8x8xf32>
    %143 = arith.mulf %138, %142 : vector<8x8xf32>
    %144 = arith.truncf %143 : vector<8x8xf32> to vector<8x8xbf16>
    %cst_47 = arith.constant dense<0.000000e+00> : vector<8x8xf32>
    %145 = tpu.matmul %144, %130, %cst_47 {dimension_numbers = #tpu.dot_dimension_numbers<[1], [0], [0], [1], [0, 0, 1, 1], [], []>} : vector<8x8xbf16>, vector<8x8xbf16>, vector<8x8xf32> -> vector<8x8xf32>
    %146 = arith.truncf %145 : vector<8x8xf32> to vector<8x8xbf16>
    %147 = vector.extract_strided_slice %45 {offsets = [3, 0, 0], sizes = [1, 8, 32], strides = [1, 1, 1]} : vector<4x8x32xbf16> to vector<1x8x32xbf16>
    %148 = vector.shape_cast %147 : vector<1x8x32xbf16> to vector<8x32xbf16>
    %cst_48 = arith.constant dense<0.000000e+00> : vector<8x32xf32>
    %149 = tpu.matmul %146, %148, %cst_48 {dimension_numbers = #tpu.dot_dimension_numbers<[1], [0], [0], [1], [0, 0, 1, 1], [], []>} : vector<8x8xbf16>, vector<8x32xbf16>, vector<8x32xf32> -> vector<8x32xf32>
    %150 = arith.addf %124, %149 : vector<8x32xf32>
    %cst_49 = arith.constant 0.000000e+00 : f32
    %151 = vector.broadcast %cst_49 : f32 to vector<8x32xf32>
    %152 = vector.extract_strided_slice %38 {offsets = [8, 0], sizes = [8, 8], strides = [1, 1]} : vector<16x32xf32> to vector<8x8xf32>
    %153 = arith.truncf %152 : vector<8x8xf32> to vector<8x8xbf16>
    %154 = vector.extract_strided_slice %39 {offsets = [8, 0], sizes = [8, 8], strides = [1, 1]} : vector<16x32xf32> to vector<8x8xf32>
    %155 = arith.truncf %154 : vector<8x8xf32> to vector<8x8xbf16>
    %156 = vector.extract_strided_slice %40 {offsets = [8, 0], sizes = [8, 8], strides = [1, 1]} : vector<16x32xf32> to vector<8x8xf32>
    %157 = arith.truncf %156 : vector<8x8xf32> to vector<8x8xbf16>
    %cst_50 = arith.constant dense<0.000000e+00> : vector<8x8xf32>
    %158 = tpu.matmul %153, %155, %cst_50 {dimension_numbers = #tpu.dot_dimension_numbers<[1], [1], [0], [0], [0, 0, 1, 0], [], []>} : vector<8x8xbf16>, vector<8x8xbf16>, vector<8x8xf32> -> vector<8x8xf32>
    %cst_51 = arith.constant -1.000000e+30 : f32
    %159 = vector.broadcast %cst_51 : f32 to vector<8x8xf32>
    %160 = arith.select %43, %158, %159 : vector<8x8xi1>, vector<8x8xf32>
    %cst_52 = arith.constant dense<0xFF800000> : vector<8xf32>
    %161 = vector.multi_reduction <maximumf>, %160, %cst_52 [1] : vector<8x8xf32> to vector<8xf32>
    %162 = vector.shape_cast %161 : vector<8xf32> to vector<8x1xf32>
    %163 = vector.broadcast %162 : vector<8x1xf32> to vector<8x8xf32>
    %164 = arith.subf %160, %163 : vector<8x8xf32>
    %165 = math.exp %164 : vector<8x8xf32>
    %cst_53 = arith.constant dense<0.000000e+00> : vector<8xf32>
    %166 = vector.multi_reduction <add>, %165, %cst_53 [1] : vector<8x8xf32> to vector<8xf32>
    %167 = vector.shape_cast %166 : vector<8xf32> to vector<8x1xf32>
    %168 = tpu.reciprocal %167 {approx = true} : vector<8x1xf32> -> vector<8x1xf32>
    %169 = vector.broadcast %168 : vector<8x1xf32> to vector<8x8xf32>
    %170 = arith.mulf %165, %169 : vector<8x8xf32>
    %171 = arith.truncf %170 : vector<8x8xf32> to vector<8x8xbf16>
    %cst_54 = arith.constant dense<0.000000e+00> : vector<8x8xf32>
    %172 = tpu.matmul %171, %157, %cst_54 {dimension_numbers = #tpu.dot_dimension_numbers<[1], [0], [0], [1], [0, 0, 1, 1], [], []>} : vector<8x8xbf16>, vector<8x8xbf16>, vector<8x8xf32> -> vector<8x8xf32>
    %173 = arith.truncf %172 : vector<8x8xf32> to vector<8x8xbf16>
    %174 = vector.extract_strided_slice %45 {offsets = [0, 0, 0], sizes = [1, 8, 32], strides = [1, 1, 1]} : vector<4x8x32xbf16> to vector<1x8x32xbf16>
    %175 = vector.shape_cast %174 : vector<1x8x32xbf16> to vector<8x32xbf16>
    %cst_55 = arith.constant dense<0.000000e+00> : vector<8x32xf32>
    %176 = tpu.matmul %173, %175, %cst_55 {dimension_numbers = #tpu.dot_dimension_numbers<[1], [0], [0], [1], [0, 0, 1, 1], [], []>} : vector<8x8xbf16>, vector<8x32xbf16>, vector<8x32xf32> -> vector<8x32xf32>
    %177 = arith.addf %151, %176 : vector<8x32xf32>
    %178 = vector.extract_strided_slice %38 {offsets = [8, 8], sizes = [8, 8], strides = [1, 1]} : vector<16x32xf32> to vector<8x8xf32>
    %179 = arith.truncf %178 : vector<8x8xf32> to vector<8x8xbf16>
    %180 = vector.extract_strided_slice %39 {offsets = [8, 8], sizes = [8, 8], strides = [1, 1]} : vector<16x32xf32> to vector<8x8xf32>
    %181 = arith.truncf %180 : vector<8x8xf32> to vector<8x8xbf16>
    %182 = vector.extract_strided_slice %40 {offsets = [8, 8], sizes = [8, 8], strides = [1, 1]} : vector<16x32xf32> to vector<8x8xf32>
    %183 = arith.truncf %182 : vector<8x8xf32> to vector<8x8xbf16>
    %cst_56 = arith.constant dense<0.000000e+00> : vector<8x8xf32>
    %184 = tpu.matmul %179, %181, %cst_56 {dimension_numbers = #tpu.dot_dimension_numbers<[1], [1], [0], [0], [0, 0, 1, 0], [], []>} : vector<8x8xbf16>, vector<8x8xbf16>, vector<8x8xf32> -> vector<8x8xf32>
    %cst_57 = arith.constant -1.000000e+30 : f32
    %185 = vector.broadcast %cst_57 : f32 to vector<8x8xf32>
    %186 = arith.select %43, %184, %185 : vector<8x8xi1>, vector<8x8xf32>
    %cst_58 = arith.constant dense<0xFF800000> : vector<8xf32>
    %187 = vector.multi_reduction <maximumf>, %186, %cst_58 [1] : vector<8x8xf32> to vector<8xf32>
    %188 = vector.shape_cast %187 : vector<8xf32> to vector<8x1xf32>
    %189 = vector.broadcast %188 : vector<8x1xf32> to vector<8x8xf32>
    %190 = arith.subf %186, %189 : vector<8x8xf32>
    %191 = math.exp %190 : vector<8x8xf32>
    %cst_59 = arith.constant dense<0.000000e+00> : vector<8xf32>
    %192 = vector.multi_reduction <add>, %191, %cst_59 [1] : vector<8x8xf32> to vector<8xf32>
    %193 = vector.shape_cast %192 : vector<8xf32> to vector<8x1xf32>
    %194 = tpu.reciprocal %193 {approx = true} : vector<8x1xf32> -> vector<8x1xf32>
    %195 = vector.broadcast %194 : vector<8x1xf32> to vector<8x8xf32>
    %196 = arith.mulf %191, %195 : vector<8x8xf32>
    %197 = arith.truncf %196 : vector<8x8xf32> to vector<8x8xbf16>
    %cst_60 = arith.constant dense<0.000000e+00> : vector<8x8xf32>
    %198 = tpu.matmul %197, %183, %cst_60 {dimension_numbers = #tpu.dot_dimension_numbers<[1], [0], [0], [1], [0, 0, 1, 1], [], []>} : vector<8x8xbf16>, vector<8x8xbf16>, vector<8x8xf32> -> vector<8x8xf32>
    %199 = arith.truncf %198 : vector<8x8xf32> to vector<8x8xbf16>
    %200 = vector.extract_strided_slice %45 {offsets = [1, 0, 0], sizes = [1, 8, 32], strides = [1, 1, 1]} : vector<4x8x32xbf16> to vector<1x8x32xbf16>
    %201 = vector.shape_cast %200 : vector<1x8x32xbf16> to vector<8x32xbf16>
    %cst_61 = arith.constant dense<0.000000e+00> : vector<8x32xf32>
    %202 = tpu.matmul %199, %201, %cst_61 {dimension_numbers = #tpu.dot_dimension_numbers<[1], [0], [0], [1], [0, 0, 1, 1], [], []>} : vector<8x8xbf16>, vector<8x32xbf16>, vector<8x32xf32> -> vector<8x32xf32>
    %203 = arith.addf %177, %202 : vector<8x32xf32>
    %204 = vector.extract_strided_slice %38 {offsets = [8, 16], sizes = [8, 8], strides = [1, 1]} : vector<16x32xf32> to vector<8x8xf32>
    %205 = arith.truncf %204 : vector<8x8xf32> to vector<8x8xbf16>
    %206 = vector.extract_strided_slice %39 {offsets = [8, 16], sizes = [8, 8], strides = [1, 1]} : vector<16x32xf32> to vector<8x8xf32>
    %207 = arith.truncf %206 : vector<8x8xf32> to vector<8x8xbf16>
    %208 = vector.extract_strided_slice %40 {offsets = [8, 16], sizes = [8, 8], strides = [1, 1]} : vector<16x32xf32> to vector<8x8xf32>
    %209 = arith.truncf %208 : vector<8x8xf32> to vector<8x8xbf16>
    %cst_62 = arith.constant dense<0.000000e+00> : vector<8x8xf32>
    %210 = tpu.matmul %205, %207, %cst_62 {dimension_numbers = #tpu.dot_dimension_numbers<[1], [1], [0], [0], [0, 0, 1, 0], [], []>} : vector<8x8xbf16>, vector<8x8xbf16>, vector<8x8xf32> -> vector<8x8xf32>
    %cst_63 = arith.constant -1.000000e+30 : f32
    %211 = vector.broadcast %cst_63 : f32 to vector<8x8xf32>
    %212 = arith.select %43, %210, %211 : vector<8x8xi1>, vector<8x8xf32>
    %cst_64 = arith.constant dense<0xFF800000> : vector<8xf32>
    %213 = vector.multi_reduction <maximumf>, %212, %cst_64 [1] : vector<8x8xf32> to vector<8xf32>
    %214 = vector.shape_cast %213 : vector<8xf32> to vector<8x1xf32>
    %215 = vector.broadcast %214 : vector<8x1xf32> to vector<8x8xf32>
    %216 = arith.subf %212, %215 : vector<8x8xf32>
    %217 = math.exp %216 : vector<8x8xf32>
    %cst_65 = arith.constant dense<0.000000e+00> : vector<8xf32>
    %218 = vector.multi_reduction <add>, %217, %cst_65 [1] : vector<8x8xf32> to vector<8xf32>
    %219 = vector.shape_cast %218 : vector<8xf32> to vector<8x1xf32>
    %220 = tpu.reciprocal %219 {approx = true} : vector<8x1xf32> -> vector<8x1xf32>
    %221 = vector.broadcast %220 : vector<8x1xf32> to vector<8x8xf32>
    %222 = arith.mulf %217, %221 : vector<8x8xf32>
    %223 = arith.truncf %222 : vector<8x8xf32> to vector<8x8xbf16>
    %cst_66 = arith.constant dense<0.000000e+00> : vector<8x8xf32>
    %224 = tpu.matmul %223, %209, %cst_66 {dimension_numbers = #tpu.dot_dimension_numbers<[1], [0], [0], [1], [0, 0, 1, 1], [], []>} : vector<8x8xbf16>, vector<8x8xbf16>, vector<8x8xf32> -> vector<8x8xf32>
    %225 = arith.truncf %224 : vector<8x8xf32> to vector<8x8xbf16>
    %226 = vector.extract_strided_slice %45 {offsets = [2, 0, 0], sizes = [1, 8, 32], strides = [1, 1, 1]} : vector<4x8x32xbf16> to vector<1x8x32xbf16>
    %227 = vector.shape_cast %226 : vector<1x8x32xbf16> to vector<8x32xbf16>
    %cst_67 = arith.constant dense<0.000000e+00> : vector<8x32xf32>
    %228 = tpu.matmul %225, %227, %cst_67 {dimension_numbers = #tpu.dot_dimension_numbers<[1], [0], [0], [1], [0, 0, 1, 1], [], []>} : vector<8x8xbf16>, vector<8x32xbf16>, vector<8x32xf32> -> vector<8x32xf32>
    %229 = arith.addf %203, %228 : vector<8x32xf32>
    %230 = vector.extract_strided_slice %38 {offsets = [8, 24], sizes = [8, 8], strides = [1, 1]} : vector<16x32xf32> to vector<8x8xf32>
    %231 = arith.truncf %230 : vector<8x8xf32> to vector<8x8xbf16>
    %232 = vector.extract_strided_slice %39 {offsets = [8, 24], sizes = [8, 8], strides = [1, 1]} : vector<16x32xf32> to vector<8x8xf32>
    %233 = arith.truncf %232 : vector<8x8xf32> to vector<8x8xbf16>
    %234 = vector.extract_strided_slice %40 {offsets = [8, 24], sizes = [8, 8], strides = [1, 1]} : vector<16x32xf32> to vector<8x8xf32>
    %235 = arith.truncf %234 : vector<8x8xf32> to vector<8x8xbf16>
    %cst_68 = arith.constant dense<0.000000e+00> : vector<8x8xf32>
    %236 = tpu.matmul %231, %233, %cst_68 {dimension_numbers = #tpu.dot_dimension_numbers<[1], [1], [0], [0], [0, 0, 1, 0], [], []>} : vector<8x8xbf16>, vector<8x8xbf16>, vector<8x8xf32> -> vector<8x8xf32>
    %cst_69 = arith.constant -1.000000e+30 : f32
    %237 = vector.broadcast %cst_69 : f32 to vector<8x8xf32>
    %238 = arith.select %43, %236, %237 : vector<8x8xi1>, vector<8x8xf32>
    %cst_70 = arith.constant dense<0xFF800000> : vector<8xf32>
    %239 = vector.multi_reduction <maximumf>, %238, %cst_70 [1] : vector<8x8xf32> to vector<8xf32>
    %240 = vector.shape_cast %239 : vector<8xf32> to vector<8x1xf32>
    %241 = vector.broadcast %240 : vector<8x1xf32> to vector<8x8xf32>
    %242 = arith.subf %238, %241 : vector<8x8xf32>
    %243 = math.exp %242 : vector<8x8xf32>
    %cst_71 = arith.constant dense<0.000000e+00> : vector<8xf32>
    %244 = vector.multi_reduction <add>, %243, %cst_71 [1] : vector<8x8xf32> to vector<8xf32>
    %245 = vector.shape_cast %244 : vector<8xf32> to vector<8x1xf32>
    %246 = tpu.reciprocal %245 {approx = true} : vector<8x1xf32> -> vector<8x1xf32>
    %247 = vector.broadcast %246 : vector<8x1xf32> to vector<8x8xf32>
    %248 = arith.mulf %243, %247 : vector<8x8xf32>
    %249 = arith.truncf %248 : vector<8x8xf32> to vector<8x8xbf16>
    %cst_72 = arith.constant dense<0.000000e+00> : vector<8x8xf32>
    %250 = tpu.matmul %249, %235, %cst_72 {dimension_numbers = #tpu.dot_dimension_numbers<[1], [0], [0], [1], [0, 0, 1, 1], [], []>} : vector<8x8xbf16>, vector<8x8xbf16>, vector<8x8xf32> -> vector<8x8xf32>
    %251 = arith.truncf %250 : vector<8x8xf32> to vector<8x8xbf16>
    %252 = vector.extract_strided_slice %45 {offsets = [3, 0, 0], sizes = [1, 8, 32], strides = [1, 1, 1]} : vector<4x8x32xbf16> to vector<1x8x32xbf16>
    %253 = vector.shape_cast %252 : vector<1x8x32xbf16> to vector<8x32xbf16>
    %cst_73 = arith.constant dense<0.000000e+00> : vector<8x32xf32>
    %254 = tpu.matmul %251, %253, %cst_73 {dimension_numbers = #tpu.dot_dimension_numbers<[1], [0], [0], [1], [0, 0, 1, 1], [], []>} : vector<8x8xbf16>, vector<8x32xbf16>, vector<8x32xf32> -> vector<8x32xf32>
    %255 = arith.addf %229, %254 : vector<8x32xf32>
    %256 = tpu.concatenate %150, %255 in 0 : vector<8x32xf32>, vector<8x32xf32> -> vector<16x32xf32>
    %c0_74 = arith.constant 0 : index
    %c0_75 = arith.constant 0 : index
    %c0_76 = arith.constant 0 : index
    %257 = vector.load %arg7[%c0_74, %c0_75, %c0_76] : memref<1x1x32xf32, #tpu.memory_space<vmem>>, vector<1x1x32xf32>
    %258 = vector.shape_cast %257 : vector<1x1x32xf32> to vector<1x32xf32>
    %259 = vector.broadcast %258 : vector<1x32xf32> to vector<16x32xf32>
    %260 = arith.addf %256, %259 : vector<16x32xf32>
    %261 = arith.addf %3, %260 : vector<16x32xf32>
    %c0_77 = arith.constant 0 : index
    %c0_78 = arith.constant 0 : index
    %c0_79 = arith.constant 0 : index
    %262 = vector.load %arg8[%c0_77, %c0_78, %c0_79] : memref<1x1x32xf32, #tpu.memory_space<vmem>>, vector<1x1x32xf32>
    %263 = vector.shape_cast %262 : vector<1x1x32xf32> to vector<1x32xf32>
    %c0_80 = arith.constant 0 : index
    %c0_81 = arith.constant 0 : index
    %c0_82 = arith.constant 0 : index
    %264 = vector.load %arg9[%c0_80, %c0_81, %c0_82] : memref<1x1x32xf32, #tpu.memory_space<vmem>>, vector<1x1x32xf32>
    %265 = vector.shape_cast %264 : vector<1x1x32xf32> to vector<1x32xf32>
    %cst_83 = arith.constant dense<0.000000e+00> : vector<16xf32>
    %266 = vector.multi_reduction <add>, %261, %cst_83 [1] : vector<16x32xf32> to vector<16xf32>
    %267 = vector.shape_cast %266 : vector<16xf32> to vector<16x1xf32>
    %cst_84 = arith.constant 3.200000e+01 : f32
    %268 = vector.broadcast %cst_84 : f32 to vector<16x1xf32>
    %269 = arith.divf %267, %268 : vector<16x1xf32>
    %270 = vector.broadcast %269 : vector<16x1xf32> to vector<16x32xf32>
    %271 = arith.subf %261, %270 : vector<16x32xf32>
    %272 = arith.mulf %271, %271 : vector<16x32xf32>
    %cst_85 = arith.constant dense<0.000000e+00> : vector<16xf32>
    %273 = vector.multi_reduction <add>, %272, %cst_85 [1] : vector<16x32xf32> to vector<16xf32>
    %274 = vector.shape_cast %273 : vector<16xf32> to vector<16x1xf32>
    %cst_86 = arith.constant 3.200000e+01 : f32
    %275 = vector.broadcast %cst_86 : f32 to vector<16x1xf32>
    %276 = arith.divf %274, %275 : vector<16x1xf32>
    %cst_87 = arith.constant 9.99999974E-6 : f32
    %277 = vector.broadcast %cst_87 : f32 to vector<16x1xf32>
    %278 = arith.addf %276, %277 : vector<16x1xf32>
    %279 = math.rsqrt %278 : vector<16x1xf32>
    %280 = vector.broadcast %279 : vector<16x1xf32> to vector<16x32xf32>
    %281 = arith.mulf %271, %280 : vector<16x32xf32>
    %282 = vector.broadcast %263 : vector<1x32xf32> to vector<16x32xf32>
    %283 = arith.mulf %281, %282 : vector<16x32xf32>
    %284 = vector.broadcast %265 : vector<1x32xf32> to vector<16x32xf32>
    %285 = arith.addf %283, %284 : vector<16x32xf32>
    %286 = arith.truncf %285 : vector<16x32xf32> to vector<16x32xbf16>
    %c0_88 = arith.constant 0 : index
    %c0_89 = arith.constant 0 : index
    %c0_90 = arith.constant 0 : index
    %287 = vector.load %arg10[%c0_88, %c0_89, %c0_90] : memref<1x32x128xbf16, #tpu.memory_space<vmem>>, vector<1x32x128xbf16>
    %288 = vector.shape_cast %287 : vector<1x32x128xbf16> to vector<32x128xbf16>
    %cst_91 = arith.constant dense<0.000000e+00> : vector<16x128xf32>
    %289 = tpu.matmul %286, %288, %cst_91 {dimension_numbers = #tpu.dot_dimension_numbers<[1], [0], [0], [1], [0, 0, 1, 1], [], []>} : vector<16x32xbf16>, vector<32x128xbf16>, vector<16x128xf32> -> vector<16x128xf32>
    %c0_92 = arith.constant 0 : index
    %c0_93 = arith.constant 0 : index
    %c0_94 = arith.constant 0 : index
    %290 = vector.load %arg11[%c0_92, %c0_93, %c0_94] : memref<1x1x128xf32, #tpu.memory_space<vmem>>, vector<1x1x128xf32>
    %291 = vector.shape_cast %290 : vector<1x1x128xf32> to vector<1x128xf32>
    %292 = vector.broadcast %291 : vector<1x128xf32> to vector<16x128xf32>
    %293 = arith.addf %289, %292 : vector<16x128xf32>
    %cst_95 = arith.constant 5.000000e-01 : f32
    %294 = vector.broadcast %cst_95 : f32 to vector<16x128xf32>
    %295 = arith.mulf %294, %293 : vector<16x128xf32>
    %cst_96 = arith.constant 4.471500e-02 : f32
    %296 = vector.broadcast %cst_96 : f32 to vector<16x128xf32>
    %297 = arith.mulf %296, %293 : vector<16x128xf32>
    %298 = arith.mulf %297, %293 : vector<16x128xf32>
    %299 = arith.mulf %298, %293 : vector<16x128xf32>
    %300 = arith.addf %293, %299 : vector<16x128xf32>
    %cst_97 = arith.constant 0.797884583 : f32
    %301 = vector.broadcast %cst_97 : f32 to vector<16x128xf32>
    %302 = arith.mulf %301, %300 : vector<16x128xf32>
    %303 = math.tanh %302 : vector<16x128xf32>
    %cst_98 = arith.constant 1.000000e+00 : f32
    %304 = vector.broadcast %cst_98 : f32 to vector<16x128xf32>
    %305 = arith.addf %304, %303 : vector<16x128xf32>
    %306 = arith.mulf %295, %305 : vector<16x128xf32>
    %307 = arith.truncf %306 : vector<16x128xf32> to vector<16x128xbf16>
    %c0_99 = arith.constant 0 : index
    %c0_100 = arith.constant 0 : index
    %c0_101 = arith.constant 0 : index
    %308 = vector.load %arg12[%c0_99, %c0_100, %c0_101] : memref<1x128x32xbf16, #tpu.memory_space<vmem>>, vector<1x128x32xbf16>
    %309 = vector.shape_cast %308 : vector<1x128x32xbf16> to vector<128x32xbf16>
    %cst_102 = arith.constant dense<0.000000e+00> : vector<16x32xf32>
    %310 = tpu.matmul %307, %309, %cst_102 {dimension_numbers = #tpu.dot_dimension_numbers<[1], [0], [0], [1], [0, 0, 1, 1], [], []>} : vector<16x128xbf16>, vector<128x32xbf16>, vector<16x32xf32> -> vector<16x32xf32>
    %c0_103 = arith.constant 0 : index
    %c0_104 = arith.constant 0 : index
    %c0_105 = arith.constant 0 : index
    %311 = vector.load %arg13[%c0_103, %c0_104, %c0_105] : memref<1x1x32xf32, #tpu.memory_space<vmem>>, vector<1x1x32xf32>
    %312 = vector.shape_cast %311 : vector<1x1x32xf32> to vector<1x32xf32>
    %313 = vector.broadcast %312 : vector<1x32xf32> to vector<16x32xf32>
    %314 = arith.addf %310, %313 : vector<16x32xf32>
    %315 = arith.addf %261, %314 : vector<16x32xf32>
    %c0_106 = arith.constant 0 : index
    %c0_107 = arith.constant 0 : index
    %316 = vector.load %arg17[%c0_106, %c0_107] : memref<16x32xf32, #tpu.memory_space<vmem>>, vector<16x32xf32>
    tpu.vector_store %arg17[%c0_106, %c0_107], %315 {strides = array<i32>} : memref<16x32xf32, #tpu.memory_space<vmem>>, vector<16x32xf32>,
    %c1_i32 = arith.constant 1 : i32
    %317 = arith.cmpi eq, %arg0, %c1_i32 : i32
    %318 = arith.extui %317 : i1 to i32
    %c0_i32_108 = arith.constant 0 : i32
    %319 = arith.cmpi ne, %318, %c0_i32_108 : i32
    scf.if %319 {
      %320 = arith.truncf %315 : vector<16x32xf32> to vector<16x32xbf16>
      %c0_109 = arith.constant 0 : index
      %c0_110 = arith.constant 0 : index
      %321 = vector.load %arg14[%c0_109, %c0_110] : memref<32x16xbf16, #tpu.memory_space<vmem>>, vector<32x16xbf16>
      %cst_111 = arith.constant dense<0.000000e+00> : vector<16x16xf32>
      %322 = tpu.matmul %320, %321, %cst_111 {dimension_numbers = #tpu.dot_dimension_numbers<[1], [0], [0], [1], [0, 0, 1, 1], [], []>} : vector<16x32xbf16>, vector<32x16xbf16>, vector<16x16xf32> -> vector<16x16xf32>
      %c0_112 = arith.constant 0 : index
      %c0_113 = arith.constant 0 : index
      %323 = vector.load %arg15[%c0_112, %c0_113] : memref<1x16xf32, #tpu.memory_space<vmem>>, vector<1x16xf32>
      %324 = vector.broadcast %323 : vector<1x16xf32> to vector<16x16xf32>
      %325 = arith.addf %322, %324 : vector<16x16xf32>
      %c0_114 = arith.constant 0 : index
      %c0_115 = arith.constant 0 : index
      %326 = vector.load %arg16[%c0_114, %c0_115] : memref<16x16xf32, #tpu.memory_space<vmem>>, vector<16x16xf32>
      tpu.vector_store %arg16[%c0_114, %c0_115], %325 {strides = array<i32>} : memref<16x16xf32, #tpu.memory_space<vmem>>, vector<16x16xf32>,
    } else {
    }
    return
  }
  func.func @transform_0(%arg0: i32) -> (i32, i32) {
    %c0_i32 = arith.constant 0 : i32
    %c0_i32_0 = arith.constant 0 : i32
    %c0_i32_1 = arith.constant 0 : i32
    return %c0_i32, %c0_i32_0 : i32, i32
  }
  func.func @transform_1(%arg0: i32) -> (i32, i32, i32) {
    %c0_i32 = arith.constant 0 : i32
    %c0_i32_0 = arith.constant 0 : i32
    %c0_i32_1 = arith.constant 0 : i32
    return %arg0, %c0_i32, %c0_i32_0 : i32, i32, i32
  }
  func.func @transform_2(%arg0: i32) -> (i32, i32, i32) {
    %c0_i32 = arith.constant 0 : i32
    %c0_i32_0 = arith.constant 0 : i32
    %c0_i32_1 = arith.constant 0 : i32
    return %arg0, %c0_i32, %c0_i32_0 : i32, i32, i32
  }
  func.func @transform_3(%arg0: i32) -> (i32, i32, i32) {
    %c0_i32 = arith.constant 0 : i32
    %c0_i32_0 = arith.constant 0 : i32
    %c0_i32_1 = arith.constant 0 : i32
    return %arg0, %c0_i32, %c0_i32_0 : i32, i32, i32
  }
  func.func @transform_4(%arg0: i32) -> (i32, i32, i32) {
    %c0_i32 = arith.constant 0 : i32
    %c0_i32_0 = arith.constant 0 : i32
    %c0_i32_1 = arith.constant 0 : i32
    return %arg0, %c0_i32, %c0_i32_0 : i32, i32, i32
  }
  func.func @transform_5(%arg0: i32) -> (i32, i32, i32, i32) {
    %c0_i32 = arith.constant 0 : i32
    %c0_i32_0 = arith.constant 0 : i32
    %c0_i32_1 = arith.constant 0 : i32
    %c0_i32_2 = arith.constant 0 : i32
    return %arg0, %c0_i32, %c0_i32_0, %c0_i32_1 : i32, i32, i32, i32
  }
  func.func @transform_6(%arg0: i32) -> (i32, i32, i32) {
    %c0_i32 = arith.constant 0 : i32
    %c0_i32_0 = arith.constant 0 : i32
    %c0_i32_1 = arith.constant 0 : i32
    return %arg0, %c0_i32, %c0_i32_0 : i32, i32, i32
  }
  func.func @transform_7(%arg0: i32) -> (i32, i32, i32) {
    %c0_i32 = arith.constant 0 : i32
    %c0_i32_0 = arith.constant 0 : i32
    %c0_i32_1 = arith.constant 0 : i32
    return %arg0, %c0_i32, %c0_i32_0 : i32, i32, i32
  }
  func.func @transform_8(%arg0: i32) -> (i32, i32, i32) {
    %c0_i32 = arith.constant 0 : i32
    %c0_i32_0 = arith.constant 0 : i32
    %c0_i32_1 = arith.constant 0 : i32
    return %arg0, %c0_i32, %c0_i32_0 : i32, i32, i32
  }
  func.func @transform_9(%arg0: i32) -> (i32, i32, i32) {
    %c0_i32 = arith.constant 0 : i32
    %c0_i32_0 = arith.constant 0 : i32
    %c0_i32_1 = arith.constant 0 : i32
    return %arg0, %c0_i32, %c0_i32_0 : i32, i32, i32
  }
  func.func @transform_10(%arg0: i32) -> (i32, i32, i32) {
    %c0_i32 = arith.constant 0 : i32
    %c0_i32_0 = arith.constant 0 : i32
    %c0_i32_1 = arith.constant 0 : i32
    return %arg0, %c0_i32, %c0_i32_0 : i32, i32, i32
  }
  func.func @transform_11(%arg0: i32) -> (i32, i32, i32) {
    %c0_i32 = arith.constant 0 : i32
    %c0_i32_0 = arith.constant 0 : i32
    %c0_i32_1 = arith.constant 0 : i32
    return %arg0, %c0_i32, %c0_i32_0 : i32, i32, i32
  }
  func.func @transform_12(%arg0: i32) -> (i32, i32, i32) {
    %c0_i32 = arith.constant 0 : i32
    %c0_i32_0 = arith.constant 0 : i32
    %c0_i32_1 = arith.constant 0 : i32
    return %arg0, %c0_i32, %c0_i32_0 : i32, i32, i32
  }
  func.func @transform_13(%arg0: i32) -> (i32, i32) {
    %c0_i32 = arith.constant 0 : i32
    %c0_i32_0 = arith.constant 0 : i32
    %c0_i32_1 = arith.constant 0 : i32
    return %c0_i32, %c0_i32_0 : i32, i32
  }
  func.func @transform_14(%arg0: i32) -> (i32, i32) {
    %c0_i32 = arith.constant 0 : i32
    %c0_i32_0 = arith.constant 0 : i32
    %c0_i32_1 = arith.constant 0 : i32
    return %c0_i32, %c0_i32_0 : i32, i32
  }
  func.func @transform_15(%arg0: i32) -> (i32, i32) {
    %c0_i32 = arith.constant 0 : i32
    %c0_i32_0 = arith.constant 0 : i32
    %c0_i32_1 = arith.constant 0 : i32
    return %c0_i32, %c0_i32_0 : i32, i32
  }
}

</mosaic_0001>

<bundles_post_ra>
// kernel: tpu_custom_call.1
= control target key start
LH: loop header
LB: loop body
LE: loop exit
PB: predicated region body
PF: predicated region fallthrough
CT: control target
= control target key end

     0   :  { %s3540_s0 = inlined_call_operand.vmem [shape: f32[16,32], index: 0, kind: input, shape index: {}]   ;;  %s3541_s1 = inlined_call_operand.vmem [shape: f32[2,1,32], index: 1, kind: input, shape index: {}]   ;;  %s3542_s2 = inlined_call_operand.vmem [shape: f32[2,1,32], index: 2, kind: input, shape index: {}]   ;;  %s3543_s3 = inlined_call_operand.vmem [shape: bf16[2,32,96], index: 3, kind: input, shape index: {}]   ;;  %s3544_s4 = inlined_call_operand.vmem [shape: f32[2,1,96], index: 4, kind: input, shape index: {}]   ;;  %s3545_s5 = inlined_call_operand.vmem [shape: bf16[2,4,8,32], index: 5, kind: input, shape index: {}]   ;;  %s3546_s6 = inlined_call_operand.vmem [shape: f32[2,1,32], index: 6, kind: input, shape index: {}]   ;;  %s3547_s7 = inlined_call_operand.vmem [shape: f32[2,1,32], index: 7, kind: input, shape index: {}]   ;;  %s3548_s8 = inlined_call_operand.vmem [shape: f32[2,1,32], index: 8, kind: input, shape index: {}]   ;;  %s3549_s9 = inlined_call_operand.vmem [shape: bf16[2,32,128], index: 9, kind: input, shape index: {}]   ;;  %s3550_s10 = inlined_call_operand.vmem [shape: f32[2,1,128], index: 10, kind: input, shape index: {}]   ;;  %s3551_s11 = inlined_call_operand.vmem [shape: bf16[2,128,32], index: 11, kind: input, shape index: {}]   ;;  %s3552_s12 = inlined_call_operand.vmem [shape: f32[2,1,32], index: 12, kind: input, shape index: {}]   ;;  %s3553_s13 = inlined_call_operand.vmem [shape: bf16[32,16], index: 13, kind: input, shape index: {}]   ;;  %s3554_s14 = inlined_call_operand.vmem [shape: f32[1,16], index: 14, kind: input, shape index: {}]   ;;  %s3555_s15 = inlined_call_operand.hbm [shape: f32[16,16], index: 15, kind: output, shape index: {}]  }
   0x1   :  { %3559 = sst [smem:[#allocation8_spill]] %s3543_s3 }
   0x2   :  { %3560 = sst [smem:[#allocation9_spill]] %s3545_s5 }
   0x3   :  { %3561 = sst [smem:[#allocation10_spill]] %s3553_s13 }
   0x4   :  { %3562 = sst [smem:[#allocation11_spill]] %s3554_s14 }
   0x5   :  { %3563 = sst [smem:[#allocation12_spill]] %s3555_s15 }
   0x6   :  { %20 = vsyncpa [#allocation4], 0  ;;  %s3091_s18 = smov 0  }
   0x7 LB: > { %3564 = sst [smem:[#allocation6_spill]] %s2991_s18  ;;  %s3097_s19 = sadd.s32 4294967295, %s2991_s18   ;;  %s2991_s18 = sphi %s3091_s18, %s26_s18  }
   0x8   : > { %p2544_p0 = scmp.ge.s32.totalorder %s2991_s18, 1  ;;  %p527_p1 = scmp.lt.s32.totalorder %s2991_s18, 3 }
   0xa   : > { %p528_p2 = pnand %p2544_p0, %p527_p1 }
   0xc   : > { %531 = sbr.rel (%p528_p2) target bundleno = 6042 (0x179a), region = 80 }
  0x11   : > { %p609_p3 = scmp.lt.s32.totalorder %s3097_s19, 1  ;;  %s3565_s3 = sld [smem:[#allocation8_spill]] }
  0x12   : > { %s3566_s5 = sld [smem:[#allocation9_spill]]  ;;  %p2553_p4 = scmp.ne.s32.totalorder %s3097_s19, 0 }
  0x13   : > { %s3103_s20 = scalar_select %p609_p3, %s3097_s19, 1 }
  0x15   : > { %s2609_s27 = sshll.u32 %s3103_s20, 4  ;;  %s633_s13 = scalar_lea.vmem %s3547_s7, %s3103_s20 }
  0x16   : > { %s636_s30 = scalar_lea.vmem %s3548_s8, %s3103_s20  ;;  %s652_s28 = scalar_lea.vmem %s3552_s12, %s3103_s20 }
  0x17   : > { %s3121_s21 = scalar_lea.vmem %s3565_s3, %s2609_s27  ;;  %s3143_s3 = scalar_lea.vmem %s3549_s9, %s2609_s27 }
  0x18   : > { %s3126_s15 = scalar_lea.vmem %s3566_s5, %s2609_s27  ;;  %s644_s5 = scalar_lea.vmem %s3550_s10, %s3103_s20 }
  0x19   : > { %3567 = sst [smem:[#allocation7_spill]] %s3126_s15  ;;  %s2612_s15 = sshll.u32 %s3103_s20, 6 }
  0x1a   : > { %s3153_s24 = scalar_lea.vmem %s3551_s11, %s2612_s15  ;;  %657 = sbr.rel (%p2553_p4) target bundleno = 33 (0x21), region = 84 }
  0x1f   : > { %v658_v0 = vld [vmem:[%s3540_s0] sm:$0xff]  ;;  %vm660_vm0 = vcmask 261120   ;;  %v659_v1 = vld [vmem:[%s3540_s0 + $0x8] sm:$0xff] }
  0x20   : > { %661 = vst.msk [vmem:[#allocation2] sm:$0xff] %vm660_vm0, %v658_v0  ;;  %662 = vst.msk [vmem:[#allocation2 + $0x8] sm:$0xff] %vm660_vm0, %v659_v1 }
  0x21 PF: > { %vm667_vm1 = vcmask 261120   ;;  %v2899_v16 = vld [vmem:[%s3121_s21 + $0x8] sm:$0xff]   ;;  %v2993_v17 = vmov 0.0   ;;  %vm2994_vm2 = vmmov 0   ;;  %v2900_v18 = vld [vmem:[%s3121_s21] sm:$0xff]   ;;  %s3568_s18 = scalar_lea.vmem %s3541_s1, %s3103_s20  ;;  %s3569_s23 = scalar_lea.vmem %s3542_s2, %s3103_s20  ;;  %vm795_vm3 = vcmask 64512  }
  0x22   : > { %2679 = vmatprep.subr.bf16.mxu1 %v2993_v17  ;;  %2683 = vmatprep.mubr.msk.bf16.mxu1 %vm2994_vm2, %v2993_v17  ;;  %v2554_v27 = vld [vmem:[%s3568_s18] ss:$0 sm:$0xff]  ;;  %s3570_s29 = scalar_lea.vmem %s3544_s4, %s3103_s20  ;;  %s2995_s27 = smov 96   ;;  %v781_v48 = vlaneseq  ;;  %vm860_vm5 = vcmask 1043456  }
  0x23   : > { %2680 = vmatpush3.bf16.msra.mxu1 %v2899_v16  ;;  %2705 = vmatprep.subr.bf16.mxu0 %v2993_v17  ;;  %v2555_v31 = vld [vmem:[%s3569_s23] ss:$0 sm:$0xff]  ;;  %s2996_s16 = smov 88   ;;  %s2997_s17 = smov 64  }
  0x24   : > { %2681 = vmatprep.subr.bf16.mxu1 %v2993_v17  ;;  %2707 = vmatprep.mubr.msk.bf16.mxu0 %vm2994_vm2, %v2993_v17  ;;  %v2556_v36 = vld [vmem:[%s3570_s29] ss:$0 sm:$0xff]  ;;  %v782_v49 = vshrl.u32 %v781_v48, 7  ;;  %v784_v50 = vand.u32 127, %v781_v48  ;;  %s2998_s15 = smov 120   ;;  %s2999_s21 = smov 56  }
  0x25   : > { %s3573_s18 = sld [smem:[#allocation7_spill]]  ;;  %s3000_s22 = smov 112  }
  0x26   : > { %vm3222_vm4 = vcmp.le.s32.totalorder %v784_v50, %v782_v49  ;;  %s3001_s14 = smov 80   ;;  %s3002_s23 = smov 72  }
  0x27   : > { %v3166_v2 = vld [vmem:[#allocation2] sm:$0xff]  ;;  %v3168_v3 = vld [vmem:[#allocation2 + $0x8] sm:$0xff]  ;;  %2682 = vmatpush3.bf16.msra.mxu1 %v2900_v18  ;;  %s3003_s26 = smov 104   ;;  %s3004_s25 = smov 48  }
  0x28   : > { %v668_v4 = vsel %vm667_vm1, %v3166_v2, 0.0  ;;  %v671_v5 = vsel %vm667_vm1, %v3168_v3, 0.0  ;;  %2687 = vmatprep.subr.bf16.mxu1 %v2993_v17  ;;  %s3005_s29 = smov 40   ;;  %p2600_p5 = scmp.ne.s32.totalorder %s3097_s19, 1 }
  0x29   : > { %669 = vadd.xlane.f32.xlu0 %v668_v4 }
  0x2d   : > { %672 = vadd.xlane.f32.xlu0 %v671_v5 }
  0xb2   : > { %v670_v6 = vpop.xlane.xlu0 %669 }
  0xb3   : > { %v675_v7 = vmul.f32 0.03125, %v670_v6 }
  0xb5   : > { %v677_v8 = vsub.f32 %v3166_v2, %v675_v7 }
  0xb6   : > { %v673_v9 = vpop.xlane.xlu0 %672 }
  0xb7   : > { %v676_v10 = vmul.f32 0.03125, %v673_v9  ;;  %v679_v11 = vmul.f32 %v677_v8, %v677_v8 }
  0xb9   : > { %v678_v12 = vsub.f32 %v3168_v3, %v676_v10  ;;  %v681_v13 = vsel %vm667_vm1, %v679_v11, 0.0 }
  0xba   : > { %682 = vadd.xlane.f32.xlu1 %v681_v13 }
  0xbb   : > { %v680_v14 = vmul.f32 %v678_v12, %v678_v12 }
  0xbd   : > { %v684_v15 = vsel %vm667_vm1, %v680_v14, 0.0 }
  0xbe   : > { %685 = vadd.xlane.f32.xlu1 %v684_v15 }
 0x143   : > { %v683_v19 = vpop.xlane.xlu1 %682 }
 0x144   : > { %v687_v20 = vmul.f32 0.03125, %v683_v19 }
 0x146   : > { %v689_v21 = vadd.f32 1e-05, %v687_v20 }
 0x147   : > { %v686_v22 = vpop.xlane.xlu1 %685 }
 0x148   : > { %2911 = vrsqrt.f32 %v689_v21  ;;  %v688_v23 = vmul.f32 0.03125, %v686_v22 }
 0x14a   : > { %v690_v24 = vadd.f32 1e-05, %v688_v23 }
 0x14c   : > { %2913 = vrsqrt.f32 %v690_v24 }
 0x155   : > { %v2912_v25 = vpop.eup %2911 }
 0x156   : > { %v693_v26 = vmul.f32 %v2912_v25, %v677_v8 }
 0x158   : > { %v701_v30 = vmul.f32 %v2554_v27, %v693_v26 }
 0x159   : > { %v2914_v28 = vpop.eup %2913 }
 0x15a   : > { %v694_v29 = vmul.f32 %v2914_v28, %v678_v12  ;;  %v709_v33 = vadd.f32 %v2555_v31, %v701_v30  ;;  %v787_v28 = vld [vmem:[%s3573_s18 + $0x4] sm:$0xf] }
 0x15c   : > { %v702_v32 = vmul.f32 %v2554_v27, %v694_v29  ;;  %v3258_v29 = vsel %vm860_vm5, %v787_v28, 0 }
 0x15e   : > { %v710_v34 = vadd.f32 %v2555_v31, %v702_v32  ;;  %v786_v32 = vld [vmem:[%s3573_s18] sm:$0xf] }
 0x160   : > { %v711_v35 = vpack.c.bf16 %v710_v34, %v709_v33 }
 0x162   : > { %2684 = vmatmul.mubr.msk.bf16.vlgmr.msra.gmra.mxu1 %vm667_vm1, %v711_v35  ;;  %v3264_v35 = vsel %vm860_vm5, %v786_v32, 0 }
 0x163   : > { %2689 = vmatprep.mubr.msk.bf16.mxu1 %vm2994_vm2, %v2993_v17 }
 0x222   : > { %v772_v37 = vpop.f32.mrf.mxu1 }
 0x223   : > { %v773_v38 = vadd.f32 %v2556_v36, %v772_v37 }
 0x224   : > { %v2685_v39 = vpop.f32.mrf.mxu1 }
 0x225   : > { %v3206_v40 = vpack.c.bf16 %v773_v38, %v773_v38  ;;  %v779_v46 = vmul.f32 0.35355338, %v773_v38 }
 0x226   : > { %v775_v41 = vpop.f32.mrf.mxu1 }
 0x227   : > { %v3208_v42 = vadd.f32 %v2556_v36, %v775_v41  ;;  %793 = vrot.lane.b32.xlu0 %v3206_v40, %s2995_s27  ;;  %v3216_v47 = vpack.c.bf16 %v779_v46, %v779_v46 }
 0x228   : > { %v2686_v43 = vpop.f32.mrf.mxu1 }
 0x229   : > { %v3322_v28 = vpack.c.bf16 %v3208_v42, %v3208_v42 }
 0x22b   : > { %908 = vrot.lane.b32.xlu0 %v3206_v40, %s2996_s16 }
 0x299   : > { %v794_v44 = vpop.permute.xlu0 %793 }
 0x29a   : > { %v800_v45 = vsel %vm795_vm3, %v794_v44, 0 }
 0x29b   : > { %2688 = vmatpush3.bf16.xpose.msra.mxu1 %v800_v45 }
 0x29c   : > { %2693 = vmatprep.subr.bf16.mxu1 %v2993_v17 }
 0x29d   : > { %v909_v6 = vpop.permute.xlu0 %908 }
 0x29e   : > { %v914_v8 = vsel %vm795_vm3, %v909_v6, 0 }
 0x2a2   : > { %2690 = vmatmul.mubr.msk.bf16.vlgmr.msra.gmra.mxu1 %vm795_vm3, %v3216_v47 }
 0x2a3   : > { %2695 = vmatprep.mubr.msk.bf16.mxu1 %vm2994_vm2, %v2993_v17 }
 0x362   : > { %v836_v52 = vpop.f32.mrf.mxu1 }
 0x363   : > { %v842_v53 = vsel %vm3222_vm4, %v836_v52, -1e+30 }
 0x364   : > { %v2691_v54 = vpop.f32.mrf.mxu1  ;;  %v843_v55 = vsel %vm795_vm3, %v842_v53, -inf }
 0x365   : > { %844 = vmax.xlane.f32.xlu1 %v843_v55 }
 0x366   : > { %v839_v56 = vpop.f32.mrf.mxu1 }
 0x368   : > { %v2692_v57 = vpop.f32.mrf.mxu1 }
 0x3ee   : > { %v845_v58 = vpop.xlane.xlu1 %844 }
 0x3ef   : > { %v846_v59 = vsub.f32 %v842_v53, %v845_v58 }
 0x3f1   : > { %v847_v60 = vmul.f32 1.442695, %v846_v59 }
 0x3f3   : > { %2915 = vpow2.f32 %v847_v60 }
 0x400   : > { %v2916_v61 = vpop.eup %2915 }
 0x401   : > { %v849_v62 = vsel %vm795_vm3, %v2916_v61, 0.0 }
 0x402   : > { %850 = vadd.xlane.f32.xlu1 %v849_v62 }
 0x413   : > { %855 = vrot.lane.b32.xlu1 %v3206_v40, %s2997_s17 }
 0x417   : > { %906 = vrot.lane.b32.xlu1 %v3216_v47, %s2998_s15 }
 0x48b   : > { %v851_v63 = vpop.xlane.xlu1 %850 }
 0x48c   : > { %2917 = vrcp.f32 %v851_v63 }
 0x48f   : > { %v856_v0 = vpop.permute.xlu1 %855 }
 0x490   : > { %v862_v1 = vsel %vm860_vm5, %v856_v0, 0 }
 0x491   : > { %2694 = vmatpush3.bf16.msra.mxu1 %v862_v1 }
 0x492   : > { %2699 = vmatprep.subr.bf16.mxu1 %v2993_v17 }
 0x493   : > { %v907_v9 = vpop.permute.xlu1 %906 }
 0x499   : > { %v2918_v4 = vpop.eup %2917 }
 0x49a   : > { %v853_v5 = vmul.f32 %v2918_v4, %v2916_v61 }
 0x49c   : > { %v854_v7 = vpack.c.bf16 %v853_v5, %v853_v5 }
 0x49e   : > { %2696 = vmatmul.mubr.msk.bf16.vlgmr.msra.gmra.mxu1 %vm795_vm3, %v854_v7 }
 0x49f   : > { %2700 = vmatpush3.bf16.xpose.msra.mxu1 %v914_v8  ;;  %2701 = vmatprep.mubr.msk.bf16.mxu1 %vm2994_vm2, %v2993_v17 }
 0x4a0   : > { %2711 = vmatprep.subr.bf16.mxu1 %v2993_v17 }
 0x4a6   : > { %2702 = vmatmul.mubr.msk.bf16.vlgmr.msra.gmra.mxu1 %vm795_vm3, %v907_v9 }
 0x4a7   : > { %2713 = vmatprep.mubr.msk.bf16.mxu1 %vm2994_vm2, %v2993_v17  ;;  %2712 = vmatpush3.bf16.msra.mxu1 %v3258_v29 }
 0x4a8   : > { %2723 = vmatprep.subr.bf16.mxu1 %v2993_v17 }
 0x55e   : > { %v898_v10 = vpop.f32.mrf.mxu1 }
 0x55f   : > { %v904_v36 = vpack.c.bf16 %v898_v10, %v898_v10 }
 0x560   : > { %v2697_v11 = vpop.f32.mrf.mxu1 }
 0x562   : > { %v901_v12 = vpop.f32.mrf.mxu1 }
 0x564   : > { %v2698_v13 = vpop.f32.mrf.mxu1 }
 0x566   : > { %v950_v14 = vpop.f32.mrf.mxu1 }
 0x567   : > { %v956_v15 = vsel %vm3222_vm4, %v950_v14, -1e+30  ;;  %v788_v14 = vld [vmem:[%s3573_s18 + $0x8] sm:$0xf] }
 0x568   : > { %v2703_v16 = vpop.f32.mrf.mxu1  ;;  %v957_v18 = vsel %vm795_vm3, %v956_v15, -inf }
 0x569   : > { %958 = vmax.xlane.f32.xlu0 %v957_v18 }
 0x56a   : > { %v953_v19 = vpop.f32.mrf.mxu1 }
 0x56c   : > { %v2704_v20 = vpop.f32.mrf.mxu1 }
 0x57f   : > { %969 = vrot.lane.b32.xlu0 %v3206_v40, %s2999_s21 }
 0x583   : > { %1110 = vrot.lane.b32.xlu0 %v3216_v47, %s3000_s22 }
 0x5f2   : > { %v959_v21 = vpop.xlane.xlu0 %958 }
 0x5f3   : > { %v960_v22 = vsub.f32 %v956_v15, %v959_v21  ;;  %v3308_v15 = vsel %vm860_vm5, %v788_v14, 0 }
 0x5f5   : > { %v961_v23 = vmul.f32 1.442695, %v960_v22 }
 0x5f6   : > { %v970_v24 = vpop.permute.xlu0 %969 }
 0x5f7   : > { %2919 = vpow2.f32 %v961_v23  ;;  %v975_v25 = vsel %vm860_vm5, %v970_v24, 0 }
 0x5f8   : > { %2706 = vmatpush3.bf16.msra.mxu0 %v975_v25 }
 0x5f9   : > { %2717 = vmatprep.subr.bf16.mxu0 %v2993_v17 }
 0x5fa   : > { %v1111_v48 = vpop.permute.xlu0 %1110 }
 0x604   : > { %v2920_v26 = vpop.eup %2919 }
 0x605   : > { %v963_v27 = vsel %vm795_vm3, %v2920_v26, 0.0 }
 0x606   : > { %964 = vadd.xlane.f32.xlu1 %v963_v27 }
 0x617   : > { %1112 = vrot.lane.b32.xlu1 %v3206_v40, %s3001_s14 }
 0x68f   : > { %v965_v30 = vpop.xlane.xlu1 %964 }
 0x690   : > { %2921 = vrcp.f32 %v965_v30 }
 0x693   : > { %v1113_v37 = vpop.permute.xlu1 %1112 }
 0x694   : > { %v1118_v43 = vsel %vm795_vm3, %v1113_v37, 0  ;;  %v780_v37 = vmul.f32 0.35355338, %v3208_v42 }
 0x69d   : > { %v2922_v31 = vpop.eup %2921 }
 0x69e   : > { %v967_v33 = vmul.f32 %v2922_v31, %v2920_v26 }
 0x6a0   : > { %v968_v34 = vpack.c.bf16 %v967_v33, %v967_v33 }
 0x6a2   : > { %2708 = vmatmul.mubr.msk.bf16.vlgmr.msra.gmra.mxu0 %vm795_vm3, %v968_v34 }
 0x6a3   : > { %2718 = vmatpush3.bf16.msra.mxu0 %v3264_v35  ;;  %2719 = vmatprep.mubr.msk.bf16.mxu0 %vm2994_vm2, %v2993_v17 }
 0x6a4   : > { %2729 = vmatprep.subr.bf16.mxu0 %v2993_v17 }
 0x6aa   : > { %2720 = vmatmul.mubr.msk.bf16.vlgmr.msra.gmra.mxu0 %vm795_vm3, %v904_v36 }
 0x6ab   : > { %2731 = vmatprep.mubr.msk.bf16.mxu0 %vm2994_vm2, %v2993_v17 }
 0x762   : > { %v1011_v38 = vpop.f32.mrf.mxu0 }
 0x763   : > { %v1017_v39 = vpack.c.bf16 %v1011_v38, %v1011_v38  ;;  %v3332_v38 = vpack.c.bf16 %v780_v37, %v780_v37 }
 0x764   : > { %v2709_v41 = vpop.f32.mrf.mxu0 }
 0x765   : > { %2714 = vmatmul.mubr.msk.bf16.vlgmr.msra.gmra.mxu1 %vm795_vm3, %v1017_v39 }
 0x766   : > { %2724 = vmatpush3.bf16.xpose.msra.mxu1 %v1118_v43  ;;  %v1014_v44 = vpop.f32.mrf.mxu0  ;;  %2725 = vmatprep.mubr.msk.bf16.mxu1 %vm2994_vm2, %v2993_v17 }
 0x767   : > { %2735 = vmatprep.subr.bf16.mxu1 %v2993_v17 }
 0x768   : > { %v2710_v45 = vpop.f32.mrf.mxu0 }
 0x76a   : > { %v3279_v46 = vpop.f32.mrf.mxu0 }
 0x76c   : > { %v2721_v49 = vpop.f32.mrf.mxu0 }
 0x76d   : > { %2726 = vmatmul.mubr.msk.bf16.vlgmr.msra.gmra.mxu1 %vm795_vm3, %v1111_v48 }
 0x76e   : > { %v1107_v50 = vpop.f32.mrf.mxu0  ;;  %2737 = vmatprep.mubr.msk.bf16.mxu1 %vm2994_vm2, %v2993_v17  ;;  %2736 = vmatpush3.bf16.msra.mxu1 %v3308_v15 }
 0x76f   : > { %2747 = vmatprep.subr.bf16.mxu1 %v2993_v17 }
 0x770   : > { %v2722_v52 = vpop.f32.mrf.mxu0 }
 0x825   : > { %v3284_v53 = vpop.f32.mrf.mxu1 }
 0x826   : > { %v1105_v39 = vadd.f32 %v3279_v46, %v3284_v53 }
 0x827   : > { %v2715_v54 = vpop.f32.mrf.mxu1 }
 0x829   : > { %v1061_v55 = vpop.f32.mrf.mxu1 }
 0x82b   : > { %v2716_v56 = vpop.f32.mrf.mxu1 }
 0x82d   : > { %v1154_v57 = vpop.f32.mrf.mxu1 }
 0x82e   : > { %v1160_v58 = vsel %vm3222_vm4, %v1154_v57, -1e+30  ;;  %v789_v57 = vld [vmem:[%s3573_s18 + $0xc] sm:$0xf] }
 0x82f   : > { %v2727_v59 = vpop.f32.mrf.mxu1  ;;  %v1161_v60 = vsel %vm795_vm3, %v1160_v58, -inf }
 0x830   : > { %1162 = vmax.xlane.f32.xlu1 %v1161_v60 }
 0x831   : > { %v1157_v61 = vpop.f32.mrf.mxu1 }
 0x833   : > { %v2728_v62 = vpop.f32.mrf.mxu1 }
 0x841   : > { %1271 = vrot.lane.b32.xlu1 %v3206_v40, %s3002_s23 }
 0x845   : > { %1269 = vrot.lane.b32.xlu1 %v3216_v47, %s3003_s26 }
 0x8b9   : > { %v1163_v63 = vpop.xlane.xlu1 %1162 }
 0x8ba   : > { %v1164_v0 = vsub.f32 %v1160_v58, %v1163_v63  ;;  %v3358_v58 = vsel %vm860_vm5, %v789_v57, 0 }
 0x8bc   : > { %v1165_v1 = vmul.f32 1.442695, %v1164_v0 }
 0x8bd   : > { %v1272_v10 = vpop.permute.xlu1 %1271 }
 0x8be   : > { %2923 = vpow2.f32 %v1165_v1  ;;  %v1277_v12 = vsel %vm795_vm3, %v1272_v10, 0 }
 0x8c1   : > { %v1270_v13 = vpop.permute.xlu1 %1269 }
 0x8cb   : > { %v2924_v4 = vpop.eup %2923 }
 0x8cc   : > { %v1167_v5 = vsel %vm795_vm3, %v2924_v4, 0.0 }
 0x8cd   : > { %1168 = vadd.xlane.f32.xlu0 %v1167_v5 }
 0x8e3   : > { %1173 = vrot.lane.b32.xlu0 %v3206_v40, %s3004_s25 }
 0x956   : > { %v1169_v6 = vpop.xlane.xlu0 %1168 }
 0x957   : > { %2925 = vrcp.f32 %v1169_v6 }
 0x95a   : > { %v1174_v7 = vpop.permute.xlu0 %1173 }
 0x95b   : > { %v1179_v8 = vsel %vm860_vm5, %v1174_v7, 0 }
 0x95c   : > { %2730 = vmatpush3.bf16.msra.mxu0 %v1179_v8 }
 0x95d   : > { %2741 = vmatprep.subr.bf16.mxu0 %v2993_v17 }
 0x964   : > { %v2926_v47 = vpop.eup %2925 }
 0x965   : > { %v1171_v9 = vmul.f32 %v2926_v47, %v2924_v4 }
 0x967   : > { %v1172_v11 = vpack.c.bf16 %v1171_v9, %v1171_v9 }
 0x969   : > { %2732 = vmatmul.mubr.msk.bf16.vlgmr.msra.gmra.mxu0 %vm795_vm3, %v1172_v11 }
 0x96a   : > { %2742 = vmatpush3.bf16.xpose.msra.mxu0 %v1277_v12  ;;  %2743 = vmatprep.mubr.msk.bf16.mxu0 %vm2994_vm2, %v2993_v17 }
 0x96b   : > { %2753 = vmatprep.subr.bf16.mxu0 %v2993_v17 }
 0x971   : > { %2744 = vmatmul.mubr.msk.bf16.vlgmr.msra.gmra.mxu0 %vm795_vm3, %v1270_v13 }
 0x972   : > { %2755 = vmatprep.mubr.msk.bf16.mxu0 %vm2994_vm2, %v2993_v17  ;;  %2754 = vmatpush3.bf16.msra.mxu0 %v3358_v58 }
 0x973   : > { %2765 = vmatprep.subr.bf16.mxu0 %v2993_v17 }
 0xa29   : > { %v1215_v16 = vpop.f32.mrf.mxu0 }
 0xa2a   : > { %v1221_v18 = vpack.c.bf16 %v1215_v16, %v1215_v16 }
 0xa2b   : > { %v2733_v19 = vpop.f32.mrf.mxu0 }
 0xa2c   : > { %2738 = vmatmul.mubr.msk.bf16.vlgmr.msra.gmra.mxu1 %vm795_vm3, %v1221_v18 }
 0xa2d   : > { %v1218_v20 = vpop.f32.mrf.mxu0  ;;  %2749 = vmatprep.mubr.msk.bf16.mxu1 %vm2994_vm2, %v2993_v17 }
 0xa2f   : > { %v2734_v21 = vpop.f32.mrf.mxu0 }
 0xa31   : > { %v1313_v22 = vpop.f32.mrf.mxu0 }
 0xa32   : > { %v1319_v23 = vsel %vm3222_vm4, %v1313_v22, -1e+30 }
 0xa33   : > { %v2745_v24 = vpop.f32.mrf.mxu0  ;;  %v1320_v25 = vsel %vm795_vm3, %v1319_v23, -inf }
 0xa34   : > { %1321 = vmax.xlane.f32.xlu0 %v1320_v25 }
 0xa35   : > { %v1316_v26 = vpop.f32.mrf.mxu0 }
 0xa37   : > { %v2746_v27 = vpop.f32.mrf.mxu0 }
 0xa4a   : > { %1332 = vrot.lane.b32.xlu0 %v3206_v40, %s3005_s29 }
 0xa4e   : > { %1544 = vrot.lane.b32.xlu0 %v3322_v28, %s2996_s16 }
 0xabd   : > { %v1322_v30 = vpop.xlane.xlu0 %1321 }
 0xabe   : > { %v1323_v31 = vsub.f32 %v1319_v23, %v1322_v30 }
 0xac0   : > { %v1324_v32 = vmul.f32 1.442695, %v1323_v31 }
 0xac1   : > { %v1333_v33 = vpop.permute.xlu0 %1332 }
 0xac2   : > { %2927 = vpow2.f32 %v1324_v32  ;;  %v1338_v34 = vsel %vm860_vm5, %v1333_v33, 0 }
 0xac3   : > { %2748 = vmatpush3.bf16.msra.mxu1 %v1338_v34 }
 0xac4   : > { %2759 = vmatprep.subr.bf16.mxu1 %v2993_v17 }
 0xac5   : > { %v1545_v46 = vpop.permute.xlu0 %1544 }
 0xac6   : > { %v1550_v53 = vsel %vm795_vm3, %v1545_v46, 0 }
 0xacf   : > { %v2928_v36 = vpop.eup %2927 }
 0xad0   : > { %v1326_v40 = vsel %vm795_vm3, %v2928_v36, 0.0 }
 0xad1   : > { %1327 = vadd.xlane.f32.xlu1 %v1326_v40 }
 0xae2   : > { %1431 = vrot.lane.b32.xlu1 %v3322_v28, %s2995_s27 }
 0xae6   : > { %1542 = vrot.lane.b32.xlu1 %v3332_v38, %s2998_s15 }
 0xaec   : > { %v1262_v41 = vpop.f32.mrf.mxu1 }
 0xaed   : > { %v3338_v43 = vadd.f32 %v1262_v41, %v1105_v39 }
 0xaee   : > { %v2739_v44 = vpop.f32.mrf.mxu1 }
 0xaf0   : > { %v1265_v45 = vpop.f32.mrf.mxu1 }
 0xaf2   : > { %v2740_v48 = vpop.f32.mrf.mxu1 }
 0xb5a   : > { %v1328_v49 = vpop.xlane.xlu1 %1327 }
 0xb5b   : > { %2929 = vrcp.f32 %v1328_v49 }
 0xb5e   : > { %v1432_v52 = vpop.permute.xlu1 %1431 }
 0xb5f   : > { %v1437_v55 = vsel %vm795_vm3, %v1432_v52, 0 }
 0xb62   : > { %v1543_v56 = vpop.permute.xlu1 %1542 }
 0xb68   : > { %v2930_v42 = vpop.eup %2929 }
 0xb69   : > { %v1330_v50 = vmul.f32 %v2930_v42, %v2928_v36 }
 0xb6b   : > { %v1331_v54 = vpack.c.bf16 %v1330_v50, %v1330_v50 }
 0xb6d   : > { %2750 = vmatmul.mubr.msk.bf16.vlgmr.msra.gmra.mxu1 %vm795_vm3, %v1331_v54 }
 0xb6e   : > { %2760 = vmatpush3.bf16.xpose.msra.mxu1 %v1437_v55  ;;  %2761 = vmatprep.mubr.msk.bf16.mxu1 %vm2994_vm2, %v2993_v17 }
 0xb6f   : > { %2771 = vmatprep.subr.bf16.mxu1 %v2993_v17 }
 0xb75   : > { %2762 = vmatmul.mubr.msk.bf16.vlgmr.msra.gmra.mxu1 %vm795_vm3, %v3332_v38 }
 0xb76   : > { %2772 = vmatpush3.bf16.xpose.msra.mxu1 %v1550_v53  ;;  %2773 = vmatprep.mubr.msk.bf16.mxu1 %vm2994_vm2, %v2993_v17 }
 0xb77   : > { %2783 = vmatprep.subr.bf16.mxu1 %v2993_v17 }
 0xb7d   : > { %2774 = vmatmul.mubr.msk.bf16.vlgmr.msra.gmra.mxu1 %vm795_vm3, %v1543_v56 }
 0xb7e   : > { %2784 = vmatpush3.bf16.msra.mxu1 %v3258_v29  ;;  %2785 = vmatprep.mubr.msk.bf16.mxu1 %vm2994_vm2, %v2993_v17 }
 0xb7f   : > { %2795 = vmatprep.subr.bf16.mxu1 %v2993_v17 }
 0xc2d   : > { %v1374_v59 = vpop.f32.mrf.mxu1 }
 0xc2e   : > { %v1380_v60 = vpack.c.bf16 %v1374_v59, %v1374_v59 }
 0xc2f   : > { %v2751_v61 = vpop.f32.mrf.mxu1 }
 0xc30   : > { %2756 = vmatmul.mubr.msk.bf16.vlgmr.msra.gmra.mxu0 %vm795_vm3, %v1380_v60 }
 0xc31   : > { %v1377_v62 = vpop.f32.mrf.mxu1  ;;  %2767 = vmatprep.mubr.msk.bf16.mxu0 %vm2994_vm2, %v2993_v17 }
 0xc33   : > { %v2752_v29 = vpop.f32.mrf.mxu1 }
 0xc35   : > { %v1473_v63 = vpop.f32.mrf.mxu1 }
 0xc36   : > { %v1479_v0 = vsel %vm3222_vm4, %v1473_v63, -1e+30 }
 0xc37   : > { %v2763_v1 = vpop.f32.mrf.mxu1  ;;  %v1480_v4 = vsel %vm795_vm3, %v1479_v0, -inf }
 0xc38   : > { %1481 = vmax.xlane.f32.xlu0 %v1480_v4 }
 0xc39   : > { %v1476_v5 = vpop.f32.mrf.mxu1 }
 0xc3b   : > { %v2764_v6 = vpop.f32.mrf.mxu1 }
 0xc3d   : > { %v1586_v7 = vpop.f32.mrf.mxu1 }
 0xc3e   : > { %v1592_v8 = vsel %vm3222_vm4, %v1586_v7, -1e+30 }
 0xc3f   : > { %v2775_v47 = vpop.f32.mrf.mxu1  ;;  %v1593_v9 = vsel %vm795_vm3, %v1592_v8, -inf }
 0xc40   : > { %1594 = vmax.xlane.f32.xlu1 %v1593_v9 }
 0xc41   : > { %v1589_v10 = vpop.f32.mrf.mxu1 }
 0xc43   : > { %v2776_v11 = vpop.f32.mrf.mxu1 }
 0xc51   : > { %1605 = vrot.lane.b32.xlu1 %v3322_v28, %s2999_s21 }
 0xc55   : > { %1742 = vrot.lane.b32.xlu1 %v3322_v28, %s3001_s14 }
 0xc59   : > { %1740 = vrot.lane.b32.xlu1 %v3332_v38, %s3000_s22 }
 0xcc1   : > { %v1482_v12 = vpop.xlane.xlu0 %1481 }
 0xcc2   : > { %v1483_v13 = vsub.f32 %v1479_v0, %v1482_v12 }
 0xcc4   : > { %v1484_v14 = vmul.f32 1.442695, %v1483_v13 }
 0xcc6   : > { %2931 = vpow2.f32 %v1484_v14 }
 0xcc9   : > { %v1595_v16 = vpop.xlane.xlu1 %1594 }
 0xcca   : > { %v1596_v18 = vsub.f32 %v1592_v8, %v1595_v16 }
 0xccc   : > { %v1597_v19 = vmul.f32 1.442695, %v1596_v18 }
 0xccd   : > { %v1606_v37 = vpop.permute.xlu1 %1605 }
 0xcce   : > { %2933 = vpow2.f32 %v1597_v19  ;;  %v1611_v41 = vsel %vm860_vm5, %v1606_v37, 0 }
 0xcd1   : > { %v1743_v54 = vpop.permute.xlu1 %1742 }
 0xcd3   : > { %v2932_v20 = vpop.eup %2931 }
 0xcd4   : > { %v1486_v21 = vsel %vm795_vm3, %v2932_v20, 0.0 }
 0xcd5   : > { %1487 = vadd.xlane.f32.xlu0 %v1486_v21  ;;  %v1741_v59 = vpop.permute.xlu1 %1740 }
 0xcdb   : > { %v2934_v22 = vpop.eup %2933 }
 0xcdc   : > { %v1599_v23 = vsel %vm795_vm3, %v2934_v22, 0.0 }
 0xcdd   : > { %1600 = vadd.xlane.f32.xlu0 %v1599_v23 }
 0xcf0   : > { %v1421_v24 = vpop.f32.mrf.mxu0 }
 0xcf1   : > { %v3380_v25 = vadd.f32 %v1421_v24, %v3338_v43 }
 0xcf2   : > { %v2757_v26 = vpop.f32.mrf.mxu0 }
 0xcf3   : > { %1492 = vrot.lane.b32.xlu0 %v3322_v28, %s2997_s17  ;;  %s3574_s17 = scalar_lea.vmem %s3546_s6, %s3103_s20 }
 0xcf4   : > { %v1424_v27 = vpop.f32.mrf.mxu0 }
 0xcf6   : > { %v2758_v30 = vpop.f32.mrf.mxu0 }
 0xd5e   : > { %v1488_v31 = vpop.xlane.xlu0 %1487 }
 0xd5f   : > { %2935 = vrcp.f32 %v1488_v31  ;;  %v2584_v31 = vld [vmem:[%s3574_s17] ss:$0 sm:$0xff] }
 0xd66   : > { %v1601_v32 = vpop.xlane.xlu0 %1600 }
 0xd67   : > { %2937 = vrcp.f32 %v1601_v32 }
 0xd6a   : > { %v1493_v33 = vpop.permute.xlu0 %1492 }
 0xd6b   : > { %v1498_v34 = vsel %vm860_vm5, %v1493_v33, 0 }
 0xd6c   : > { %v2936_v36 = vpop.eup %2935  ;;  %2766 = vmatpush3.bf16.msra.mxu0 %v1498_v34 }
 0xd6d   : > { %2777 = vmatprep.subr.bf16.mxu0 %v2993_v17  ;;  %v1490_v40 = vmul.f32 %v2936_v36, %v2932_v20 }
 0xd6f   : > { %v1491_v39 = vpack.c.bf16 %v1490_v40, %v1490_v40 }
 0xd71   : > { %2768 = vmatmul.mubr.msk.bf16.vlgmr.msra.gmra.mxu0 %vm795_vm3, %v1491_v39 }
 0xd72   : > { %2778 = vmatpush3.bf16.msra.mxu0 %v1611_v41  ;;  %2779 = vmatprep.mubr.msk.bf16.mxu0 %vm2994_vm2, %v2993_v17 }
 0xd73   : > { %2789 = vmatprep.subr.bf16.mxu0 %v2993_v17 }
 0xd74   : > { %v2938_v43 = vpop.eup %2937 }
 0xd75   : > { %v1603_v44 = vmul.f32 %v2938_v43, %v2934_v22 }
 0xd77   : > { %v1604_v45 = vpack.c.bf16 %v1603_v44, %v1603_v44 }
 0xd79   : > { %2780 = vmatmul.mubr.msk.bf16.vlgmr.msra.gmra.mxu0 %vm795_vm3, %v1604_v45 }
 0xd7a   : > { %2790 = vmatpush3.bf16.msra.mxu0 %v3264_v35  ;;  %2791 = vmatprep.mubr.msk.bf16.mxu0 %vm2994_vm2, %v2993_v17  ;;  %v1748_v35 = vsel %vm795_vm3, %v1743_v54, 0 }
 0xd7b   : > { %2801 = vmatprep.subr.bf16.mxu0 %v2993_v17 }
 0xe31   : > { %v1534_v48 = vpop.f32.mrf.mxu0 }
 0xe32   : > { %v1540_v49 = vpack.c.bf16 %v1534_v48, %v1534_v48 }
 0xe33   : > { %v2769_v42 = vpop.f32.mrf.mxu0 }
 0xe34   : > { %2792 = vmatmul.mubr.msk.bf16.vlgmr.msra.gmra.mxu0 %vm795_vm3, %v1540_v49 }
 0xe35   : > { %v1537_v50 = vpop.f32.mrf.mxu0  ;;  %2803 = vmatprep.mubr.msk.bf16.mxu0 %vm2994_vm2, %v2993_v17 }
 0xe37   : > { %v2770_v52 = vpop.f32.mrf.mxu0 }
 0xe39   : > { %v1647_v55 = vpop.f32.mrf.mxu0 }
 0xe3a   : > { %v1653_v46 = vpack.c.bf16 %v1647_v55, %v1647_v55 }
 0xe3b   : > { %v2781_v53 = vpop.f32.mrf.mxu0 }
 0xe3c   : > { %2786 = vmatmul.mubr.msk.bf16.vlgmr.msra.gmra.mxu1 %vm795_vm3, %v1653_v46 }
 0xe3d   : > { %2796 = vmatpush3.bf16.xpose.msra.mxu1 %v1748_v35  ;;  %v1650_v56 = vpop.f32.mrf.mxu0  ;;  %2797 = vmatprep.mubr.msk.bf16.mxu1 %vm2994_vm2, %v2993_v17 }
 0xe3e   : > { %2807 = vmatprep.subr.bf16.mxu1 %v2993_v17 }
 0xe3f   : > { %v2782_v57 = vpop.f32.mrf.mxu0 }
 0xe44   : > { %2798 = vmatmul.mubr.msk.bf16.vlgmr.msra.gmra.mxu1 %vm795_vm3, %v1741_v59 }
 0xe45   : > { %2808 = vmatpush3.bf16.msra.mxu1 %v3308_v15  ;;  %2809 = vmatprep.mubr.msk.bf16.mxu1 %vm2994_vm2, %v2993_v17 }
 0xe46   : > { %2819 = vmatprep.subr.bf16.mxu1 %v2993_v17 }
 0xef4   : > { %v1734_v60 = vpop.f32.mrf.mxu0 }
 0xef6   : > { %v2793_v61 = vpop.f32.mrf.mxu0 }
 0xef8   : > { %v1737_v62 = vpop.f32.mrf.mxu0 }
 0xefa   : > { %v2794_v29 = vpop.f32.mrf.mxu0 }
 0xefc   : > { %v1691_v63 = vpop.f32.mrf.mxu1 }
 0xefd   : > { %v3409_v0 = vadd.f32 %v1734_v60, %v1691_v63 }
 0xefe   : > { %v2787_v1 = vpop.f32.mrf.mxu1 }
 0xf00   : > { %v1694_v4 = vpop.f32.mrf.mxu1 }
 0xf02   : > { %v2788_v5 = vpop.f32.mrf.mxu1 }
 0xf04   : > { %v1784_v6 = vpop.f32.mrf.mxu1 }
 0xf05   : > { %v1790_v7 = vsel %vm3222_vm4, %v1784_v6, -1e+30 }
 0xf06   : > { %v2799_v15 = vpop.f32.mrf.mxu1  ;;  %v1791_v8 = vsel %vm795_vm3, %v1790_v7, -inf }
 0xf07   : > { %1792 = vmax.xlane.f32.xlu0 %v1791_v8 }
 0xf08   : > { %v1787_v47 = vpop.f32.mrf.mxu1 }
 0xf0a   : > { %v2800_v9 = vpop.f32.mrf.mxu1 }
 0xf1d   : > { %1803 = vrot.lane.b32.xlu0 %v3322_v28, %s3004_s25 }
 0xf21   : > { %1896 = vrot.lane.b32.xlu0 %v3332_v38, %s3003_s26 }
 0xf90   : > { %v1793_v10 = vpop.xlane.xlu0 %1792 }
 0xf91   : > { %v1794_v11 = vsub.f32 %v1790_v7, %v1793_v10 }
 0xf93   : > { %v1795_v12 = vmul.f32 1.442695, %v1794_v11 }
 0xf94   : > { %v1804_v13 = vpop.permute.xlu0 %1803 }
 0xf95   : > { %2939 = vpow2.f32 %v1795_v12  ;;  %v1809_v14 = vsel %vm860_vm5, %v1804_v13, 0 }
 0xf96   : > { %2802 = vmatpush3.bf16.msra.mxu0 %v1809_v14 }
 0xf97   : > { %2813 = vmatprep.subr.bf16.mxu0 %v2993_v17 }
 0xf98   : > { %v1897_v24 = vpop.permute.xlu0 %1896 }
 0xfa2   : > { %v2940_v16 = vpop.eup %2939 }
 0xfa3   : > { %v1797_v18 = vsel %vm795_vm3, %v2940_v16, 0.0 }
 0xfa4   : > { %1798 = vadd.xlane.f32.xlu1 %v1797_v18  ;;  %v2902_v18 = vld [vmem:[%s3143_s3] sm:$0xff]  }
 0xfb5   : > { %1898 = vrot.lane.b32.xlu1 %v3322_v28, %s3002_s23 }
0x102d   : > { %v1799_v19 = vpop.xlane.xlu1 %1798 }
0x102e   : > { %2941 = vrcp.f32 %v1799_v19 }
0x1031   : > { %v1899_v21 = vpop.permute.xlu1 %1898 }
0x1032   : > { %v1904_v23 = vsel %vm795_vm3, %v1899_v21, 0 }
0x103b   : > { %v2942_v38 = vpop.eup %2941 }
0x103c   : > { %v1801_v20 = vmul.f32 %v2942_v38, %v2940_v16 }
0x103e   : > { %v1802_v22 = vpack.c.bf16 %v1801_v20, %v1801_v20 }
0x1040   : > { %2804 = vmatmul.mubr.msk.bf16.vlgmr.msra.gmra.mxu0 %vm795_vm3, %v1802_v22 }
0x1041   : > { %2814 = vmatpush3.bf16.xpose.msra.mxu0 %v1904_v23  ;;  %2815 = vmatprep.mubr.msk.bf16.mxu0 %vm2994_vm2, %v2993_v17 }
0x1042   : > { %2825 = vmatprep.subr.bf16.mxu0 %v2993_v17 }
0x1048   : > { %2816 = vmatmul.mubr.msk.bf16.vlgmr.msra.gmra.mxu0 %vm795_vm3, %v1897_v24 }
0x1049   : > { %2826 = vmatpush3.bf16.msra.mxu0 %v3358_v58  ;;  %2827 = vmatprep.mubr.msk.bf16.mxu0 %vm2994_vm2, %v2993_v17  ;;  %v2059_v58 = vadd.f32 %v2584_v31, %v3380_v25 }
0x104a   : > { %2839 = vmatprep.subr.bf16.mxu0 %v2993_v17 }
0x104b   : > { %v3445_v40 = vadd.f32 %v2059_v58, %v3166_v2  ;;  %v2586_v58 = vld [vmem:[%s636_s30] ss:$0 sm:$0xff] }
0x104d   : > { %v2065_v44 = vsel %vm667_vm1, %v3445_v40, 0.0 }
0x1100   : > { %v1845_v26 = vpop.f32.mrf.mxu0 }
0x1101   : > { %v1851_v27 = vpack.c.bf16 %v1845_v26, %v1845_v26 }
0x1102   : > { %v2805_v30 = vpop.f32.mrf.mxu0 }
0x1103   : > { %2810 = vmatmul.mubr.msk.bf16.vlgmr.msra.gmra.mxu1 %vm795_vm3, %v1851_v27  ;;  %v2585_v27 = vld [vmem:[%s633_s13] ss:$0 sm:$0xff] }
0x1104   : > { %v1848_v32 = vpop.f32.mrf.mxu0  ;;  %2821 = vmatprep.mubr.msk.bf16.mxu1 %vm2994_vm2, %v2993_v17 }
0x1106   : > { %v2806_v33 = vpop.f32.mrf.mxu0 }
0x1108   : > { %v1940_v34 = vpop.f32.mrf.mxu0 }
0x1109   : > { %v1946_v36 = vsel %vm3222_vm4, %v1940_v34, -1e+30 }
0x110a   : > { %v2817_v37 = vpop.f32.mrf.mxu0  ;;  %v1947_v39 = vsel %vm795_vm3, %v1946_v36, -inf }
0x110b   : > { %1948 = vmax.xlane.f32.xlu1 %v1947_v39  ;;  %v2903_v39 = vld [vmem:[%s3153_s24 + $0x38] sm:$0xff]  }
0x110c   : > { %v1943_v41 = vpop.f32.mrf.mxu0 }
0x110d   : > { %v2904_v41 = vld [vmem:[%s3153_s24 + $0x30] sm:$0xff]  }
0x110e   : > { %v2818_v43 = vpop.f32.mrf.mxu0 }
0x110f   : > { %2066 = vadd.xlane.f32.xlu1 %v2065_v44  ;;  %v2905_v43 = vld [vmem:[%s3153_s24 + $0x28] sm:$0xff]   ;;  %v2906_v44 = vld [vmem:[%s3153_s24 + $0x20] sm:$0xff]  }
0x1194   : > { %v1949_v45 = vpop.xlane.xlu1 %1948 }
0x1195   : > { %v1950_v25 = vsub.f32 %v1946_v36, %v1949_v45  ;;  %v2907_v45 = vld [vmem:[%s3153_s24 + $0x18] sm:$0xff]  }
0x1197   : > { %v1951_v48 = vmul.f32 1.442695, %v1950_v25  ;;  %v2908_v25 = vld [vmem:[%s3153_s24 + $0x10] sm:$0xff]  }
0x1198   : > { %v2067_v29 = vpop.xlane.xlu1 %2066 }
0x1199   : > { %2943 = vpow2.f32 %v1951_v48  ;;  %v2071_v63 = vmul.f32 0.03125, %v2067_v29  ;;  %v2909_v48 = vld [vmem:[%s3153_s24 + $0x8] sm:$0xff]  }
0x119b   : > { %v2073_v5 = vsub.f32 %v3445_v40, %v2071_v63 }
0x119d   : > { %v2075_v9 = vmul.f32 %v2073_v5, %v2073_v5 }
0x119f   : > { %v2077_v10 = vsel %vm667_vm1, %v2075_v9, 0.0 }
0x11a6   : > { %v2944_v49 = vpop.eup %2943 }
0x11a7   : > { %v1953_v51 = vsel %vm795_vm3, %v2944_v49, 0.0 }
0x11a8   : > { %1954 = vadd.xlane.f32.xlu0 %v1953_v51  ;;  %v2587_v51 = vld [vmem:[%s644_s5] ss:$0 sm:$0xff] }
0x11be   : > { %1959 = vrot.lane.b32.xlu0 %v3322_v28, %s3005_s29  ;;  %s3576_s29 = sld [smem:[#allocation11_spill]] (!%p2600_p5) }
0x11c3   : > { %v1889_v2 = vpop.f32.mrf.mxu1 }
0x11c4   : > { %v1895_v42 = vadd.f32 %v1889_v2, %v3409_v0 }
0x11c5   : > { %v2811_v50 = vpop.f32.mrf.mxu1 }
0x11c7   : > { %v1892_v52 = vpop.f32.mrf.mxu1 }
0x11c9   : > { %v2812_v54 = vpop.f32.mrf.mxu1 }
0x1231   : > { %v1955_v55 = vpop.xlane.xlu0 %1954 }
0x1232   : > { %2945 = vrcp.f32 %v1955_v55 }
0x1235   : > { %v1960_v46 = vpop.permute.xlu0 %1959 }
0x1236   : > { %v1965_v53 = vsel %vm860_vm5, %v1960_v46, 0 }
0x1237   : > { %2820 = vmatpush3.bf16.msra.mxu1 %v1965_v53 }
0x1238   : > { %2831 = vmatprep.subr.bf16.mxu1 %v2993_v17 }
0x123f   : > { %v2946_v35 = vpop.eup %2945 }
0x1240   : > { %v1957_v56 = vmul.f32 %v2946_v35, %v2944_v49  ;;  %v2910_v49 = vld [vmem:[%s3153_s24] sm:$0xff]  }
0x1242   : > { %v1958_v57 = vpack.c.bf16 %v1957_v56, %v1957_v56 }
0x1244   : > { %2822 = vmatmul.mubr.msk.bf16.vlgmr.msra.gmra.mxu1 %vm795_vm3, %v1958_v57 }
0x1245   : > { %2835 = vmatprep.mubr.msk.bf16.mxu1 %vm2994_vm2, %v2993_v17 }
0x1304   : > { %v2001_v28 = vpop.f32.mrf.mxu1 }
0x1305   : > { %v2007_v59 = vpack.c.bf16 %v2001_v28, %v2001_v28 }
0x1306   : > { %v2823_v60 = vpop.f32.mrf.mxu1 }
0x1307   : > { %2828 = vmatmul.mubr.msk.bf16.vlgmr.msra.gmra.mxu0 %vm795_vm3, %v2007_v59 }
0x1308   : > { %v2004_v61 = vpop.f32.mrf.mxu1  ;;  %2855 = vmatprep.mubr.msk.bf16.mxu0 %vm2994_vm2, %v2993_v17  ;;  %2840 = vmatpush3.bf16.msra.mxu0 %v2903_v39 }
0x1309   : > { %2841 = vmatprep.subr.bf16.mxu0 %v2993_v17 }
0x130a   : > { %v2824_v62 = vpop.f32.mrf.mxu1 }
0x130c   : > { %2842 = vmatpush3.bf16.msra.mxu0 %v2904_v41 }
0x130d   : > { %2843 = vmatprep.subr.bf16.mxu0 %v2993_v17 }
0x1310   : > { %2844 = vmatpush3.bf16.msra.mxu0 %v2905_v43 }
0x1311   : > { %2845 = vmatprep.subr.bf16.mxu0 %v2993_v17 }
0x1314   : > { %2846 = vmatpush3.bf16.msra.mxu0 %v2906_v44 }
0x1315   : > { %2847 = vmatprep.subr.bf16.mxu0 %v2993_v17 }
0x1318   : > { %2848 = vmatpush3.bf16.msra.mxu0 %v2907_v45 }
0x1319   : > { %2849 = vmatprep.subr.bf16.mxu0 %v2993_v17 }
0x131c   : > { %2850 = vmatpush3.bf16.msra.mxu0 %v2908_v25 }
0x131d   : > { %2851 = vmatprep.subr.bf16.mxu0 %v2993_v17 }
0x1320   : > { %2852 = vmatpush3.bf16.msra.mxu0 %v2909_v48 }
0x1321   : > { %2853 = vmatprep.subr.bf16.mxu0 %v2993_v17 }
0x1324   : > { %2854 = vmatpush3.bf16.msra.mxu0 %v2910_v49 }
0x13c7   : > { %v2045_v0 = vpop.f32.mrf.mxu0 }
0x13c8   : > { %v2051_v1 = vadd.f32 %v2045_v0, %v1895_v42 }
0x13c9   : > { %v2829_v4 = vpop.f32.mrf.mxu0 }
0x13ca   : > { %v2060_v6 = vadd.f32 %v2584_v31, %v2051_v1 }
0x13cb   : > { %v2048_v7 = vpop.f32.mrf.mxu0 }
0x13cc   : > { %v3464_v15 = vadd.f32 %v2060_v6, %v3168_v3  ;;  %v2901_v3 = vld [vmem:[%s3143_s3 + $0x8] sm:$0xff]  }
0x13cd   : > { %v2830_v8 = vpop.f32.mrf.mxu0  ;;  %2832 = vmatpush3.bf16.msra.mxu1 %v2901_v3 }
0x13ce   : > { %v2068_v47 = vsel %vm667_vm1, %v3464_v15, 0.0  ;;  %2833 = vmatprep.subr.bf16.mxu1 %v2993_v17  ;;  %v2591_v8 = vld [vmem:[%s652_s28] ss:$0 sm:$0xff]  ;;  %s3575_s28 = sld [smem:[#allocation10_spill]] (!%p2600_p5) }
0x13cf   : > { %2069 = vadd.xlane.f32.xlu1 %v2068_v47 }
0x13d1   : > { %2834 = vmatpush3.bf16.msra.mxu1 %v2902_v18 }
0x13d3   : > { %2078 = vadd.xlane.f32.xlu1 %v2077_v10 }
0x1458   : > { %v2070_v11 = vpop.xlane.xlu1 %2069 }
0x1459   : > { %v2072_v12 = vmul.f32 0.03125, %v2070_v11 }
0x145b   : > { %v2074_v13 = vsub.f32 %v3464_v15, %v2072_v12 }
0x145c   : > { %v2079_v19 = vpop.xlane.xlu1 %2078 }
0x145d   : > { %v2076_v14 = vmul.f32 %v2074_v13, %v2074_v13  ;;  %v2083_v38 = vmul.f32 0.03125, %v2079_v19 }
0x145f   : > { %v2080_v16 = vsel %vm667_vm1, %v2076_v14, 0.0  ;;  %v2085_v20 = vadd.f32 1e-05, %v2083_v38 }
0x1460   : > { %2081 = vadd.xlane.f32.xlu1 %v2080_v16 }
0x1461   : > { %2947 = vrsqrt.f32 %v2085_v20 }
0x146e   : > { %v2948_v24 = vpop.eup %2947 }
0x146f   : > { %v2089_v26 = vmul.f32 %v2948_v24, %v2073_v5 }
0x1471   : > { %v2097_v32 = vmul.f32 %v2585_v27, %v2089_v26 }
0x1473   : > { %v2105_v34 = vadd.f32 %v2586_v58, %v2097_v32 }
0x14e9   : > { %v2082_v21 = vpop.xlane.xlu1 %2081 }
0x14ea   : > { %v2084_v22 = vmul.f32 0.03125, %v2082_v21 }
0x14ec   : > { %v2086_v23 = vadd.f32 1e-05, %v2084_v22 }
0x14ee   : > { %2949 = vrsqrt.f32 %v2086_v23 }
0x14fb   : > { %v2950_v30 = vpop.eup %2949 }
0x14fc   : > { %v2090_v31 = vmul.f32 %v2950_v30, %v2074_v13 }
0x14fe   : > { %v2098_v33 = vmul.f32 %v2585_v27, %v2090_v31 }
0x1500   : > { %v2106_v36 = vadd.f32 %v2586_v58, %v2098_v33 }
0x1502   : > { %v2107_v37 = vpack.c.bf16 %v2106_v36, %v2105_v34 }
0x1504   : > { %2836 = vmatmul.mubr.msk.bf16.vlgmr.msra.gmra.mxu1 %vm667_vm1, %v2107_v37 }
0x15c4   : > { %v2168_v2 = vpop.f32.mrf.mxu1 }
0x15c5   : > { %v2169_v42 = vadd.f32 %v2587_v51, %v2168_v2 }
0x15c6   : > { %v2837_v50 = vpop.f32.mrf.mxu1 }
0x15c7   : > { %v2177_v52 = vmul.f32 0.044715, %v2169_v42  ;;  %v2175_v0 = vmul.f32 0.5, %v2169_v42 }
0x15c8   : > { %v2171_v54 = vpop.f32.mrf.mxu1 }
0x15c9   : > { %v2179_v55 = vmul.f32 %v2177_v52, %v2169_v42  ;;  %v2172_v46 = vadd.f32 %v2587_v51, %v2171_v54 }
0x15ca   : > { %v2838_v53 = vpop.f32.mrf.mxu1 }
0x15cb   : > { %v2181_v35 = vmul.f32 %v2179_v55, %v2169_v42  ;;  %v2178_v56 = vmul.f32 0.044715, %v2172_v46  ;;  %v2176_v1 = vmul.f32 0.5, %v2172_v46 }
0x15cd   : > { %v2183_v57 = vadd.f32 %v2181_v35, %v2169_v42  ;;  %v2180_v28 = vmul.f32 %v2178_v56, %v2172_v46 }
0x15cf   : > { %v2185_v59 = vmul.f32 0.7978846, %v2183_v57  ;;  %v2182_v17 = vmul.f32 %v2180_v28, %v2172_v46 }
0x15d1   : > { %2951 = vtanh.f32 %v2185_v59  ;;  %v2184_v60 = vadd.f32 %v2182_v17, %v2172_v46 }
0x15d3   : > { %v2186_v61 = vmul.f32 0.7978846, %v2184_v60 }
0x15d5   : > { %2953 = vtanh.f32 %v2186_v61 }
0x15de   : > { %v2952_v62 = vpop.eup %2951 }
0x15df   : > { %v2189_v29 = vadd.f32 1.0, %v2952_v62 }
0x15e1   : > { %v2191_v5 = vmul.f32 %v2189_v29, %v2175_v0 }
0x15e2   : > { %v2954_v63 = vpop.eup %2953 }
0x15e3   : > { %v2190_v4 = vadd.f32 1.0, %v2954_v63 }
0x15e5   : > { %v2192_v6 = vmul.f32 %v2190_v4, %v2176_v1 }
0x15e7   : > { %v2193_v7 = vpack.c.bf16 %v2192_v6, %v2191_v5 }
0x15e9   : > { %2856 = vmatmul.mubr.bf16.vlgmr.msra.gmra.mxu0 %v2193_v7 }
0x16a9   : > { %v2299_v47 = vpop.f32.mrf.mxu0 }
0x16aa   : > { %v2300_v9 = vadd.f32 %v2591_v8, %v2299_v47 }
0x16ab   : > { %v2857_v10 = vpop.f32.mrf.mxu0 }
0x16ac   : > { %v2306_v11 = vadd.f32 %v2300_v9, %v3445_v40 }
0x16ad   : > { %v2302_v12 = vpop.f32.mrf.mxu0 }
0x16ae   : > { %2308 = vst.msk [vmem:[#allocation2] sm:$0xff] %vm667_vm1, %v2306_v11  ;;  %v2303_v13 = vadd.f32 %v2591_v8, %v2302_v12  ;;  %2313 = sbr.rel (%p2600_p5) target bundleno = 6020 (0x1784), region = 88 }
0x16af   : > { %v2858_v14 = vpop.f32.mrf.mxu0 }
0x16b0   : > { %v2307_v16 = vadd.f32 %v2303_v13, %v3464_v15 }
0x16b2   : > { %2309 = vst.msk [vmem:[#allocation2 + $0x8] sm:$0xff] %vm667_vm1, %v2307_v16 }
0x16b3   : > { %v2955_v3 = vld [vmem:[%s3575_s28 + $0x8] sm:$0xff]   ;;  %v3006_v18 = vmov 0.0   ;;  %v2956_v40 = vld [vmem:[%s3575_s28] sm:$0xff]   ;;  %vm3007_vm6 = vmmov 0   ;;  %v2314_v15 = vpack.c.bf16 %v2307_v16, %v2306_v11  ;;  %vm2382_vm7 = vcmask 130048  }
0x16b4   : > { %2859 = vmatprep.subr.bf16.mxu0 %v3006_v18  ;;  %2863 = vmatprep.mubr.msk.bf16.mxu0 %vm3007_vm6, %v3006_v18  ;;  %v2601_v19 = vld [vmem:[%s3576_s29] ss:$0 sm:$0xff] }
0x16b5   : > { %2860 = vmatpush3.bf16.msra.mxu0 %v2955_v3 }
0x16b6   : > { %2861 = vmatprep.subr.bf16.mxu0 %v3006_v18 }
0x16b9   : > { %2862 = vmatpush3.bf16.msra.mxu0 %v2956_v40 }
0x16bc   : > { %2864 = vmatmul.mubr.msk.bf16.vlgmr.msra.gmra.mxu0 %vm667_vm1, %v2314_v15 }
0x177c   : > { %v2375_v38 = vpop.f32.mrf.mxu0 }
0x177d   : > { %v2376_v20 = vadd.f32 %v2601_v19, %v2375_v38 }
0x177e   : > { %v2865_v21 = vpop.f32.mrf.mxu0 }
0x177f   : > { %2383 = vst.msk [vmem:[#allocation3] sm:$0xff] %vm2382_vm7, %v2376_v20 }
0x1780   : > { %v2378_v22 = vpop.f32.mrf.mxu0 }
0x1781   : > { %v2379_v23 = vadd.f32 %v2601_v19, %v2378_v22 }
0x1782   : > { %v2866_v24 = vpop.f32.mrf.mxu0 }
0x1783   : > { %2384 = vst.msk [vmem:[#allocation3 + $0x8] sm:$0xff] %vm2382_vm7, %v2379_v23 }
0x1784 PF: > { %p2871_p6 = scmp.eq.s32.totalorder %s3097_s19, 1  ;;  %s3008_s27 = smov [#allocation3]  }
0x1785   : > { %s2391_s16 = sshll.u32 %s3008_s27, 4  ;;  %s2392_s16 = int_to_ptr.vmem [resolvable:$true] %s2391_s16 }
0x1786   : > { %s2957_s17 = scalar_lea.vmem %s2392_s16, 256  ;;  %p2964_p10 = scmp.lt.s32.totalorder %s2392_s16, %s2392_s16 }
0x1787   : > { %p2958_p7 = scmp.ne.s32.totalorder %s2392_s16, %s2957_s17  ;;  %p2965_p11 = scmp.lt.s32.totalorder %s2957_s17, %s2957_s17 }
0x1789   : > { %p2959_p8 = pnand %p2958_p7, %p2871_p6  ;;  %p2966_p12 = por %p2965_p11, %p2964_p10 }
0x178b   : > { %p2960_p9 = pneg %p2959_p8 }
0x178d   : > { %p2967_p13 = pnand %p2966_p12, %p2960_p9 }
0x178f   : > { %2970 = shalt.err (!%p2967_p13)
}
0x1790   : > { %s3009_s15 = smov 128   ;;  %s3010_s21 = smov 8  }
0x1791   : > { %s3577_s13 = sld [smem:[#allocation12_spill]] }
0x1797   : > { %2868 = dma.vmem_to_hbm [thread:$0]  (%p2871_p6), %s2392_s16, 256, %s3577_s13, [#allocation4], %s3009_s15, %s3009_s15, %s3010_s21  }
0x1798   : > { %2986 = dma.done.wait (%p2871_p6), [#allocation4], 256  }
0x1799   : > { %2988 = vsyncadd (%p2871_p6), [#allocation4], 4294967040 }
0x179a PF: > { %s3578_s30 = sld [smem:[#allocation6_spill]] }
0x17a0   : > { %s26_s18 = sadd.s32 1, %s3578_s30  }
0x17a1   : > { %p23_p0 = scmp.ge.s32.totalorder %s26_s18, 4  }
0x17a3   :  { %25 = sbr.rel (!%p23_p0) target bundleno = 7 (0x7), region = 148 }
0x17a8   :  { %2407 = vsyncpa [#allocation4], 1 }
0x17a9   :  { %2409 = vsyncpa [#allocation4 + $0x1], 1 }

</bundles_post_ra>
